<compile_context>
chip_gen: v6e
topology: v6e:2x2x1
jax: 0.10.0
libtpu: 0.0.40
codegen_flags: <defaults>
</compile_context>

<pallas_src>
import functools

import jax
import jax.numpy as jnp
from jax.experimental import pallas as pl
from jax.experimental.pallas import tpu as pltpu


LANE = 128


def _round_up(x, m):
    return (x + m - 1) // m * m


# ----------------------------------------------------------------------------
# Conv2d (3x3, zero padding done in the wrapper) + fused BN statistics
# ----------------------------------------------------------------------------
def _conv2d_kernel(x_ref, w_ref, b_ref, y_ref, s_ref, ss_ref, *, kh, kw, stride):
    # x_ref : (1, Hp, Wp, Cin_p)        padded input, one batch element
    # w_ref : (kh*kw*Cin_p, CO_T)       bf16, im2col-ordered weights (one Cout tile)
    # b_ref : (1, CO_T)                 f32 bias
    # y_ref : (1, Hs, Ws, CO_T)         conv output (strided if stride > 1)
    # s_ref : (1, 1, CO_T)              per-(n, Cout-tile) channel sums
    # ss_ref: (1, 1, CO_T)              per-(n, Cout-tile) channel sums of squares
    _, Hp, Wp, Cin = x_ref.shape
    Cout = y_ref.shape[3]
    Ho, Wo = Hp - kh + 1, Wp - kw + 1

    # im2col: 9 shifted views, concatenated on the lane axis -> one big-K matmul.
    cols = []
    for i in range(kh):                           # static unroll over the taps
        for j in range(kw):
            patch = x_ref[0, pl.ds(i, Ho), pl.ds(j, Wo), :]          # (Ho, Wo, Cin)
            cols.append(patch.reshape(Ho * Wo, Cin).astype(jnp.bfloat16))
    im2col = jnp.concatenate(cols, axis=-1)                          # (Ho*Wo, kh*kw*Cin)

    # Single MXU pass, bf16 inputs, f32 accumulation; bias fused.
    acc = jnp.dot(im2col, w_ref[...], preferred_element_type=jnp.float32)
    acc = acc + b_ref[...]                                           # (Ho*Wo, Cout)

    if stride > 1:
        # Direct strided output: subsample before any HBM write.
        acc = acc.reshape(Ho, Wo, Cout)[::stride, ::stride, :]
        Hs, Ws = acc.shape[0], acc.shape[1]
        acc = acc.reshape(Hs * Ws, Cout)
    else:
        Hs, Ws = Ho, Wo

    # Fused BatchNorm statistics (avoid an extra full HBM read of y later).
    s_ref[...] = jnp.sum(acc, axis=0).reshape(1, 1, Cout)
    ss_ref[...] = jnp.sum(acc * acc, axis=0).reshape(1, 1, Cout)

    y_ref[...] = acc.reshape(1, Hs, Ws, Cout).astype(y_ref.dtype)


def conv2d_bn_stats_nhwc(x_p, w_p, b_p, *, kh, kw, stride, out_dtype):
    """Conv on already (spatially + channel) padded NHWC input.

    x_p: (N, Hp, Wp, Cin_p)   Cin_p multiple of 128
    w_p: (kh*kw*Cin_p, Cout_p) bf16
    b_p: (1, Cout_p) f32
    Returns: y (N, Hs, Ws, Cout_p), sums (N, 1, Cout_p) f32, sumsq (N, 1, Cout_p) f32
    """
    N, Hp, Wp, Cin_p = x_p.shape
    Cout_p = w_p.shape[1]
    Ho, Wo = Hp - kh + 1, Wp - kw + 1
    Hs = (Ho + stride - 1) // stride
    Ws = (Wo + stride - 1) // stride
    CO_T = LANE
    n_co = Cout_p // CO_T

    kernel = functools.partial(_conv2d_kernel, kh=kh, kw=kw, stride=stride)

    return pl.pallas_call(
        kernel,
        out_shape=(
            jax.ShapeDtypeStruct((N, Hs, Ws, Cout_p), out_dtype),
            jax.ShapeDtypeStruct((N, 1, Cout_p), jnp.float32),
            jax.ShapeDtypeStruct((N, 1, Cout_p), jnp.float32),
        ),
        grid=(N, n_co),
        in_specs=[
            pl.BlockSpec((1, Hp, Wp, Cin_p), lambda n, c: (n, 0, 0, 0)),
            pl.BlockSpec((kh * kw * Cin_p, CO_T), lambda n, c: (0, c)),
            pl.BlockSpec((1, CO_T), lambda n, c: (0, c)),
        ],
        out_specs=(
            pl.BlockSpec((1, Hs, Ws, CO_T), lambda n, c: (n, 0, 0, c)),
            pl.BlockSpec((1, 1, CO_T), lambda n, c: (n, 0, c)),
            pl.BlockSpec((1, 1, CO_T), lambda n, c: (n, 0, c)),
        ),
        compiler_params=pltpu.CompilerParams(
            dimension_semantics=("parallel", "parallel"),
            vmem_limit_bytes=32 * 1024 * 1024,
        ),
    )(x_p, w_p, b_p)


# ----------------------------------------------------------------------------
# BatchNorm apply (precomputed per-channel scale/shift) + ReLU — tiled elementwise
# ----------------------------------------------------------------------------
def _bn_apply_relu_kernel(y_ref, sc_ref, sh_ref, o_ref):
    # y_ref/o_ref: (1, TH, W, Cp) ; sc_ref/sh_ref: (1, Cp) f32
    y = y_ref[...].astype(jnp.float32)
    out = y * sc_ref[...] + sh_ref[...]        # pure VPU multiply-add
    o_ref[...] = jnp.maximum(out, 0.0).astype(o_ref.dtype)


def bn_relu_apply_nhwc(y, scale, shift):
    N, H, W, Cp = y.shape
    TH = 8 if H % 8 == 0 else H                # spatial tiling -> real multi-step grid
    nht = H // TH
    return pl.pallas_call(
        _bn_apply_relu_kernel,
        out_shape=jax.ShapeDtypeStruct((N, H, W, Cp), y.dtype),
        grid=(N, nht),
        in_specs=[
            pl.BlockSpec((1, TH, W, Cp), lambda n, t: (n, t, 0, 0)),
            pl.BlockSpec((1, Cp), lambda n, t: (0, 0)),
            pl.BlockSpec((1, Cp), lambda n, t: (0, 0)),
        ],
        out_specs=pl.BlockSpec((1, TH, W, Cp), lambda n, t: (n, t, 0, 0)),
        compiler_params=pltpu.CompilerParams(
            dimension_semantics=("parallel", "parallel"),
            vmem_limit_bytes=32 * 1024 * 1024,
        ),
    )(y, scale.reshape(1, Cp).astype(jnp.float32),
      shift.reshape(1, Cp).astype(jnp.float32))


# ----------------------------------------------------------------------------
# The module
# ----------------------------------------------------------------------------
class Convolution:
    def __init__(self, inChannel, outChannel, kernel_size=3, padding=1, stride=1,
                 upsampling=False, downsampling=False, sampling_factor=2,
                 key=jax.random.PRNGKey(0)):
        self.Cin, self.Cout = inChannel, outChannel
        self.K = kernel_size
        self.padding = padding
        self.stride = stride
        self.upsampling = upsampling
        self.downsampling = downsampling
        self.sampling_factor = sampling_factor

        k1, k2, k3, k4 = jax.random.split(key, 4)

        def uinit(k, shape, fan_in):
            bound = 1.0 / jnp.sqrt(fan_in)
            return jax.random.uniform(k, shape, jnp.float32, -bound, bound)

        fan_in = inChannel * kernel_size * kernel_size
        # weights stored as (KH, KW, Cin, Cout) f32 (reference copy)
        self.conv_w = uinit(k1, (kernel_size, kernel_size, inChannel, outChannel), fan_in)
        self.conv_b = uinit(k2, (outChannel,), fan_in)

        fan_in_d = outChannel * kernel_size * kernel_size
        self.down_w = uinit(k3, (kernel_size, kernel_size, outChannel, outChannel), fan_in_d)
        self.down_b = uinit(k4, (outChannel,), fan_in_d)

        # BatchNorm2d default init (gamma=1, beta=0); training-mode batch stats.
        self.gamma = jnp.ones((outChannel,), jnp.float32)
        self.beta = jnp.zeros((outChannel,), jnp.float32)

        # ---- kernel-side lane-dense (128-padded), im2col-reshaped parameters ----
        self.Cin_p = _round_up(inChannel, LANE)
        self.Cout_p = _round_up(outChannel, LANE)

        def pad_reshape_w(w, cin_p, cout_p):
            KH, KW, Ci, Co = w.shape
            wp = jnp.pad(w, ((0, 0), (0, 0), (0, cin_p - Ci), (0, cout_p - Co)))
            return wp.reshape(KH * KW * cin_p, cout_p).astype(jnp.bfloat16)

        self._conv_w_p = pad_reshape_w(self.conv_w, self.Cin_p, self.Cout_p)
        self._conv_b_p = jnp.pad(self.conv_b, (0, self.Cout_p - outChannel)).reshape(1, self.Cout_p)
        self._down_w_p = pad_reshape_w(self.down_w, self.Cout_p, self.Cout_p)
        self._down_b_p = jnp.pad(self.down_b, (0, self.Cout_p - outChannel)).reshape(1, self.Cout_p)
        self._gamma_p = jnp.pad(self.gamma, (0, self.Cout_p - outChannel))
        self._beta_p = jnp.pad(self.beta, (0, self.Cout_p - outChannel))

    def __call__(self, x_nchw):
        x = jnp.transpose(x_nchw, (0, 2, 3, 1))          # NCHW -> NHWC (glue)

        if self.upsampling:                               # nearest, integer scale
            f = self.sampling_factor
            x = jnp.repeat(jnp.repeat(x, f, axis=1), f, axis=2)

        # One pad op: spatial halo + channel padding to a lane-dense multiple of 128.
        p = self.padding
        xp = jnp.pad(x, ((0, 0), (p, p), (p, p), (0, self.Cin_p - self.Cin)))

        y, s, ss = conv2d_bn_stats_nhwc(
            xp, self._conv_w_p, self._conv_b_p,
            kh=self.K, kw=self.K, stride=self.stride, out_dtype=x.dtype)

        # Per-channel scale/shift from the conv-fused statistics (tiny O(C) glue).
        N, Hs, Ws, Cp = y.shape
        cnt = N * Hs * Ws
        mean = (jnp.sum(s, axis=0) / cnt).reshape(Cp)
        var = jnp.maximum((jnp.sum(ss, axis=0) / cnt).reshape(Cp) - mean * mean, 0.0)
        inv = jax.lax.rsqrt(var + 1e-5)
        scale = self._gamma_p * inv
        shift = self._beta_p - mean * scale

        y = bn_relu_apply_nhwc(y, scale, shift)

        if self.downsampling:
            pd = self.padding
            yp = jnp.pad(y, ((0, 0), (pd, pd), (pd, pd), (0, 0)))  # channels already padded
            y, _, _ = conv2d_bn_stats_nhwc(
                yp, self._down_w_p, self._down_b_p,
                kh=self.K, kw=self.K, stride=self.sampling_factor, out_dtype=y.dtype)

        y = y[..., :self.Cout]                             # drop channel padding
        return jnp.transpose(y, (0, 3, 1, 2))              # NHWC -> NCHW


# ----------------------------------------------------------------------------
# Pure-JAX f32 reference (for correctness check)
# ----------------------------------------------------------------------------
def _reference(mod, x_nchw):
    def conv(x, w, b, stride, padding):
        w_oihw = jnp.transpose(w, (3, 2, 0, 1))
        y = jax.lax.conv_general_dilated(
            x, w_oihw, window_strides=(stride, stride),
            padding=[(padding, padding), (padding, padding)],
            dimension_numbers=("NCHW", "OIHW", "NCHW"))
        return y + b[None, :, None, None]

    x = x_nchw
    if mod.upsampling:
        f = mod.sampling_factor
        x = jnp.repeat(jnp.repeat(x, f, axis=2), f, axis=3)
    y = conv(x, mod.conv_w, mod.conv_b, mod.stride, mod.padding)
    mean = jnp.mean(y, axis=(0, 2, 3), keepdims=True)
    var = jnp.mean(jnp.square(y - mean), axis=(0, 2, 3), keepdims=True)
    y = (y - mean) * jax.lax.rsqrt(var + 1e-5)
    y = y * mod.gamma[None, :, None, None] + mod.beta[None, :, None, None]
    y = jnp.maximum(y, 0.0)
    if mod.downsampling:
        y = conv(y, mod.down_w, mod.down_b, mod.sampling_factor, mod.padding)
    return y


if __name__ == "__main__":
    key = jax.random.PRNGKey(0)
    kx, kp = jax.random.split(key)

    N, Cin, H, W = 2, 4, 16, 16
    Cout = 8
    x = jax.random.normal(kx, (N, Cin, H, W), jnp.float32)

    mod = Convolution(Cin, Cout, upsampling=False, downsampling=False, key=kp)

    out = jax.block_until_ready(mod(x))
    ref = jax.block_until_ready(_reference(mod, x))

    assert out.shape == (N, Cout, H, W), out.shape
    # bf16 MXU inputs (f32 accumulation) -> relaxed tolerance vs. the f32 reference.
    max_err = float(jnp.max(jnp.abs(out - ref)))
    assert jnp.allclose(out, ref, rtol=5e-2, atol=5e-2), max_err

    print("KERNEL_OK")
</pallas_src>

<mosaic_0001>
module attributes {stable_mosaic.version = 11 : i64} {
  func.func @_conv2d_kernel(%arg0: i32, %arg1: i32, %arg2: memref<1x18x18x128xf32, #tpu.memory_space<vmem>>, %arg3: memref<1152x128xbf16, #tpu.memory_space<vmem>>, %arg4: memref<1x128xf32, #tpu.memory_space<vmem>>, %arg5: memref<1x16x16x128xf32, #tpu.memory_space<vmem>>, %arg6: memref<1x1x128xf32, #tpu.memory_space<vmem>>, %arg7: memref<1x1x128xf32, #tpu.memory_space<vmem>>) attributes {dimension_semantics = [#tpu.dimension_semantics<parallel>, #tpu.dimension_semantics<parallel>], iteration_bounds = array<i64: 2, 1>, scalar_prefetch = 0 : i64, scratch_operands = 0 : i64, tpu.core_type = #tpu.core_type<tc>, window_params = [{transform_indices = @transform_0, window_bounds = array<i64: 1, 18, 18, 128>}, {transform_indices = @transform_1, window_bounds = array<i64: 1152, 128>}, {transform_indices = @transform_2, window_bounds = array<i64: 1, 128>}, {transform_indices = @transform_3, window_bounds = array<i64: 1, 16, 16, 128>}, {transform_indices = @transform_4, window_bounds = array<i64: 1, 1, 128>}, {transform_indices = @transform_5, window_bounds = array<i64: 1, 1, 128>}]} {
    %c0 = arith.constant 0 : index
    %c0_0 = arith.constant 0 : index
    %c0_1 = arith.constant 0 : index
    %c0_2 = arith.constant 0 : index
    %0 = vector.load %arg2[%c0, %c0_0, %c0_1, %c0_2] : memref<1x18x18x128xf32, #tpu.memory_space<vmem>>, vector<1x16x16x128xf32>
    %1 = vector.shape_cast %0 : vector<1x16x16x128xf32> to vector<16x16x128xf32>
    %2 = vector.shape_cast %1 : vector<16x16x128xf32> to vector<256x128xf32>
    %3 = arith.truncf %2 : vector<256x128xf32> to vector<256x128xbf16>
    %c0_3 = arith.constant 0 : index
    %c0_4 = arith.constant 0 : index
    %c1 = arith.constant 1 : index
    %c0_5 = arith.constant 0 : index
    %4 = vector.load %arg2[%c0_3, %c0_4, %c1, %c0_5] : memref<1x18x18x128xf32, #tpu.memory_space<vmem>>, vector<1x16x16x128xf32>
    %5 = vector.shape_cast %4 : vector<1x16x16x128xf32> to vector<16x16x128xf32>
    %6 = vector.shape_cast %5 : vector<16x16x128xf32> to vector<256x128xf32>
    %7 = arith.truncf %6 : vector<256x128xf32> to vector<256x128xbf16>
    %c0_6 = arith.constant 0 : index
    %c0_7 = arith.constant 0 : index
    %c2 = arith.constant 2 : index
    %c0_8 = arith.constant 0 : index
    %8 = vector.load %arg2[%c0_6, %c0_7, %c2, %c0_8] : memref<1x18x18x128xf32, #tpu.memory_space<vmem>>, vector<1x16x16x128xf32>
    %9 = vector.shape_cast %8 : vector<1x16x16x128xf32> to vector<16x16x128xf32>
    %10 = vector.shape_cast %9 : vector<16x16x128xf32> to vector<256x128xf32>
    %11 = arith.truncf %10 : vector<256x128xf32> to vector<256x128xbf16>
    %c0_9 = arith.constant 0 : index
    %c1_10 = arith.constant 1 : index
    %c0_11 = arith.constant 0 : index
    %c0_12 = arith.constant 0 : index
    %12 = vector.load %arg2[%c0_9, %c1_10, %c0_11, %c0_12] : memref<1x18x18x128xf32, #tpu.memory_space<vmem>>, vector<1x16x16x128xf32>
    %13 = vector.shape_cast %12 : vector<1x16x16x128xf32> to vector<16x16x128xf32>
    %14 = vector.shape_cast %13 : vector<16x16x128xf32> to vector<256x128xf32>
    %15 = arith.truncf %14 : vector<256x128xf32> to vector<256x128xbf16>
    %c0_13 = arith.constant 0 : index
    %c1_14 = arith.constant 1 : index
    %c1_15 = arith.constant 1 : index
    %c0_16 = arith.constant 0 : index
    %16 = vector.load %arg2[%c0_13, %c1_14, %c1_15, %c0_16] : memref<1x18x18x128xf32, #tpu.memory_space<vmem>>, vector<1x16x16x128xf32>
    %17 = vector.shape_cast %16 : vector<1x16x16x128xf32> to vector<16x16x128xf32>
    %18 = vector.shape_cast %17 : vector<16x16x128xf32> to vector<256x128xf32>
    %19 = arith.truncf %18 : vector<256x128xf32> to vector<256x128xbf16>
    %c0_17 = arith.constant 0 : index
    %c1_18 = arith.constant 1 : index
    %c2_19 = arith.constant 2 : index
    %c0_20 = arith.constant 0 : index
    %20 = vector.load %arg2[%c0_17, %c1_18, %c2_19, %c0_20] : memref<1x18x18x128xf32, #tpu.memory_space<vmem>>, vector<1x16x16x128xf32>
    %21 = vector.shape_cast %20 : vector<1x16x16x128xf32> to vector<16x16x128xf32>
    %22 = vector.shape_cast %21 : vector<16x16x128xf32> to vector<256x128xf32>
    %23 = arith.truncf %22 : vector<256x128xf32> to vector<256x128xbf16>
    %c0_21 = arith.constant 0 : index
    %c2_22 = arith.constant 2 : index
    %c0_23 = arith.constant 0 : index
    %c0_24 = arith.constant 0 : index
    %24 = vector.load %arg2[%c0_21, %c2_22, %c0_23, %c0_24] : memref<1x18x18x128xf32, #tpu.memory_space<vmem>>, vector<1x16x16x128xf32>
    %25 = vector.shape_cast %24 : vector<1x16x16x128xf32> to vector<16x16x128xf32>
    %26 = vector.shape_cast %25 : vector<16x16x128xf32> to vector<256x128xf32>
    %27 = arith.truncf %26 : vector<256x128xf32> to vector<256x128xbf16>
    %c0_25 = arith.constant 0 : index
    %c2_26 = arith.constant 2 : index
    %c1_27 = arith.constant 1 : index
    %c0_28 = arith.constant 0 : index
    %28 = vector.load %arg2[%c0_25, %c2_26, %c1_27, %c0_28] : memref<1x18x18x128xf32, #tpu.memory_space<vmem>>, vector<1x16x16x128xf32>
    %29 = vector.shape_cast %28 : vector<1x16x16x128xf32> to vector<16x16x128xf32>
    %30 = vector.shape_cast %29 : vector<16x16x128xf32> to vector<256x128xf32>
    %31 = arith.truncf %30 : vector<256x128xf32> to vector<256x128xbf16>
    %c0_29 = arith.constant 0 : index
    %c2_30 = arith.constant 2 : index
    %c2_31 = arith.constant 2 : index
    %c0_32 = arith.constant 0 : index
    %32 = vector.load %arg2[%c0_29, %c2_30, %c2_31, %c0_32] : memref<1x18x18x128xf32, #tpu.memory_space<vmem>>, vector<1x16x16x128xf32>
    %33 = vector.shape_cast %32 : vector<1x16x16x128xf32> to vector<16x16x128xf32>
    %34 = vector.shape_cast %33 : vector<16x16x128xf32> to vector<256x128xf32>
    %35 = arith.truncf %34 : vector<256x128xf32> to vector<256x128xbf16>
    %36 = tpu.concatenate %3, %7, %11, %15, %19, %23, %27, %31, %35 in 1 : vector<256x128xbf16>, vector<256x128xbf16>, vector<256x128xbf16>, vector<256x128xbf16>, vector<256x128xbf16>, vector<256x128xbf16>, vector<256x128xbf16>, vector<256x128xbf16>, vector<256x128xbf16> -> vector<256x1152xbf16>
    %c0_33 = arith.constant 0 : index
    %c0_34 = arith.constant 0 : index
    %37 = vector.load %arg3[%c0_33, %c0_34] : memref<1152x128xbf16, #tpu.memory_space<vmem>>, vector<1152x128xbf16>
    %cst = arith.constant dense<0.000000e+00> : vector<256x128xf32>
    %38 = tpu.matmul %36, %37, %cst {dimension_numbers = #tpu.dot_dimension_numbers<[1], [0], [0], [1], [0, 0, 1, 1], [], []>} : vector<256x1152xbf16>, vector<1152x128xbf16>, vector<256x128xf32> -> vector<256x128xf32>
    %c0_35 = arith.constant 0 : index
    %c0_36 = arith.constant 0 : index
    %39 = vector.load %arg4[%c0_35, %c0_36] : memref<1x128xf32, #tpu.memory_space<vmem>>, vector<1x128xf32>
    %40 = vector.broadcast %39 : vector<1x128xf32> to vector<256x128xf32>
    %41 = arith.addf %38, %40 : vector<256x128xf32>
    %cst_37 = arith.constant dense<0.000000e+00> : vector<128xf32>
    %42 = vector.multi_reduction <add>, %41, %cst_37 [0] : vector<256x128xf32> to vector<128xf32>
    %43 = vector.shape_cast %42 : vector<128xf32> to vector<1x1x128xf32>
    %c0_38 = arith.constant 0 : index
    %c0_39 = arith.constant 0 : index
    %c0_40 = arith.constant 0 : index
    %44 = vector.load %arg6[%c0_38, %c0_39, %c0_40] : memref<1x1x128xf32, #tpu.memory_space<vmem>>, vector<1x1x128xf32>
    tpu.vector_store %arg6[%c0_38, %c0_39, %c0_40], %43 {strides = array<i32>} : memref<1x1x128xf32, #tpu.memory_space<vmem>>, vector<1x1x128xf32>,
    %45 = arith.mulf %41, %41 : vector<256x128xf32>
    %cst_41 = arith.constant dense<0.000000e+00> : vector<128xf32>
    %46 = vector.multi_reduction <add>, %45, %cst_41 [0] : vector<256x128xf32> to vector<128xf32>
    %47 = vector.shape_cast %46 : vector<128xf32> to vector<1x1x128xf32>
    %c0_42 = arith.constant 0 : index
    %c0_43 = arith.constant 0 : index
    %c0_44 = arith.constant 0 : index
    %48 = vector.load %arg7[%c0_42, %c0_43, %c0_44] : memref<1x1x128xf32, #tpu.memory_space<vmem>>, vector<1x1x128xf32>
    tpu.vector_store %arg7[%c0_42, %c0_43, %c0_44], %47 {strides = array<i32>} : memref<1x1x128xf32, #tpu.memory_space<vmem>>, vector<1x1x128xf32>,
    %49 = vector.shape_cast %41 : vector<256x128xf32> to vector<1x16x16x128xf32>
    %c0_45 = arith.constant 0 : index
    %c0_46 = arith.constant 0 : index
    %c0_47 = arith.constant 0 : index
    %c0_48 = arith.constant 0 : index
    %50 = vector.load %arg5[%c0_45, %c0_46, %c0_47, %c0_48] : memref<1x16x16x128xf32, #tpu.memory_space<vmem>>, vector<1x16x16x128xf32>
    tpu.vector_store %arg5[%c0_45, %c0_46, %c0_47, %c0_48], %49 {strides = array<i32>} : memref<1x16x16x128xf32, #tpu.memory_space<vmem>>, vector<1x16x16x128xf32>,
    return
  }
  func.func @transform_0(%arg0: i32, %arg1: i32) -> (i32, i32, i32, i32) {
    %c0_i32 = arith.constant 0 : i32
    %c0_i32_0 = arith.constant 0 : i32
    %c0_i32_1 = arith.constant 0 : i32
    %c0_i32_2 = arith.constant 0 : i32
    return %arg0, %c0_i32, %c0_i32_0, %c0_i32_1 : i32, i32, i32, i32
  }
  func.func @transform_1(%arg0: i32, %arg1: i32) -> (i32, i32) {
    %c0_i32 = arith.constant 0 : i32
    %c0_i32_0 = arith.constant 0 : i32
    return %c0_i32, %arg1 : i32, i32
  }
  func.func @transform_2(%arg0: i32, %arg1: i32) -> (i32, i32) {
    %c0_i32 = arith.constant 0 : i32
    %c0_i32_0 = arith.constant 0 : i32
    return %c0_i32, %arg1 : i32, i32
  }
  func.func @transform_3(%arg0: i32, %arg1: i32) -> (i32, i32, i32, i32) {
    %c0_i32 = arith.constant 0 : i32
    %c0_i32_0 = arith.constant 0 : i32
    %c0_i32_1 = arith.constant 0 : i32
    return %arg0, %c0_i32, %c0_i32_0, %arg1 : i32, i32, i32, i32
  }
  func.func @transform_4(%arg0: i32, %arg1: i32) -> (i32, i32, i32) {
    %c0_i32 = arith.constant 0 : i32
    %c0_i32_0 = arith.constant 0 : i32
    return %arg0, %c0_i32, %arg1 : i32, i32, i32
  }
  func.func @transform_5(%arg0: i32, %arg1: i32) -> (i32, i32, i32) {
    %c0_i32 = arith.constant 0 : i32
    %c0_i32_0 = arith.constant 0 : i32
    return %arg0, %c0_i32, %arg1 : i32, i32, i32
  }
}

</mosaic_0001>

<bundles_post_ra>
// kernel: tpu_custom_call.1
= control target key start
LH: loop header
LB: loop body
LE: loop exit
PB: predicated region body
PF: predicated region fallthrough
CT: control target
= control target key end

     0   :  { %11 = vsyncpa [#allocation3], 0  ;;  %s4843_s0 = inlined_call_operand.vmem [shape: f32[2,18,18,128], index: 0, kind: input, shape index: {}]   ;;  %s4844_s1 = inlined_call_operand.vmem [shape: bf16[1152,128], index: 1, kind: input, shape index: {}]   ;;  %s4845_s2 = inlined_call_operand.vmem [shape: f32[1,128], index: 2, kind: input, shape index: {}]   ;;  %s4846_s3 = inlined_call_operand.hbm [shape: f32[2,16,16,128], index: 3, kind: output, shape index: {0}]   ;;  %s4847_s4 = inlined_call_operand.hbm [shape: f32[2,1,128], index: 4, kind: output, shape index: {1}]   ;;  %s4848_s5 = inlined_call_operand.hbm [shape: f32[2,1,128], index: 5, kind: output, shape index: {2}]  }
   0x1   :  { %13 = vsyncpa [#allocation3 + $0x1], 0 }
   0x2   :  { %14 = vsyncpa [#allocation5], 0 }
   0x3   :  { %16 = vsyncpa [#allocation5 + $0x1], 0  ;;  %s3583_s18 = smov 0   ;;  %s3585_s19 = smov 0  }
   0x4   :  { %s3587_s20 = smov 0   ;;  %s3589_s21 = smov 0  }
   0x5   :  { %s3591_s22 = smov 0   ;;  %s3593_s23 = smov 0  }
   0x6 LB: > { %s2456_s24 = sadd.s32 4294967295, %s3546_s23   ;;  %s4849_s25 = sadd.s32 4294967294, %s3546_s23   ;;  %s3546_s23 = sphi %s3593_s23, %s22_s23   ;;  %s3542_s22 = sphi %s3591_s22, %s4881_s22   ;;  %s3538_s21 = sphi %s3589_s21, %s4880_s21   ;;  %s3534_s20 = sphi %s3587_s20, %s4879_s20   ;;  %s3530_s19 = sphi %s3585_s19, %s4878_s19   ;;  %s3526_s18 = sphi %s3583_s18, %s4877_s18  }
   0x7   : > { %s34_s26 = sadd.s32 1, %s3542_s22  ;;  %s121_s27 = sadd.s32 1, %s3534_s20 }
   0x8   : > { %p36_p0 = scmp.ge.s32.totalorder %s34_s26, 2  ;;  %p131_p1 = scmp.ne.s32.totalorder %s3534_s20, %s3530_s19 }
   0x9   : > { %p132_p2 = scmp.eq.s32.totalorder %s2456_s24, 1  ;;  %p137_p3 = scmp.ne.s32.totalorder %s3530_s19, %s3526_s18 }
   0xa   : > { %s4883_s26 = smov (%p36_p0, %s34_s26), 0  ;;  %p138_p5 = scmp.eq.s32.totalorder %s4849_s25, 1 }
   0xb   : > { %p3625_p4 = por %p132_p2, %p131_p1  ;;  %s116_s29 = ssub.s32 %s3542_s22, %s4883_s26 }
   0xc   : > { %p2462_p6 = scmp.ge.s32.totalorder %s3546_s23, 1  ;;  %p119_p7 = scmp.eq.s32.totalorder %s116_s29, 0 }
   0xd   : > { %p3634_p8 = por %p138_p5, %p137_p3  ;;  %p233_p9 = scmp.lt.s32.totalorder %s3546_s23, 3 }
   0xe   : > { %s3640_s6 = scalar_select %p119_p7, %s3534_s20, %s121_s27  }
   0xf   : > { %p234_p10 = pnand %p2462_p6, %p233_p9 }
  0x11   : > { %237 = sbr.rel (%p234_p10) target bundleno = 603 (0x25b), region = 32 }
  0x16   : > { %v3342_v0 = vld [vmem:[%s4844_s1 + $0x78] sm:$0xff]   ;;  %p276_p11 = scmp.lt.s32.totalorder %s3538_s21, 1  ;;  %v3344_v2 = vld [vmem:[%s4844_s1 + $0x70] sm:$0xff]   ;;  %v3346_v4 = vld [vmem:[%s4844_s1 + $0x68] sm:$0xff]   ;;  %s2737_s14 = sshll.u32 %s3538_s21, 12 }
  0x17   : > { %v3343_v1 = vld [vmem:[%s4844_s1 + $0x38] sm:$0xff]   ;;  %2738 = vmatprep.subr.bf16.mxu0 %v3342_v0  ;;  %3258 = vmatprep.subr.bf16.mxu1 %v3342_v0  ;;  %v3345_v3 = vld [vmem:[%s4844_s1 + $0x30] sm:$0xff]   ;;  %v3347_v5 = vld [vmem:[%s4844_s1 + $0x28] sm:$0xff]  }
  0x18   : > { %2739 = vmatpush3.bf16.msra.mxu0 %v3343_v1  ;;  %3266 = vmatpush3.bf16.msra.mxu1 %v3343_v1  ;;  %s277_s17 = scalar_select %p276_p11, %s3538_s21, 1  ;;  %v3348_v6 = vld [vmem:[%s4844_s1 + $0x60] sm:$0xff]   ;;  %v3350_v8 = vld [vmem:[%s4844_s1 + $0x58] sm:$0xff]   ;;  %v3352_v10 = vld [vmem:[%s4844_s1 + $0x50] sm:$0xff]  }
  0x19   : > { %2740 = vmatprep.subr.bf16.mxu0 %v3344_v2  ;;  %3259 = vmatprep.subr.bf16.mxu1 %v3344_v2  ;;  %v3349_v7 = vld [vmem:[%s4844_s1 + $0x20] sm:$0xff]   ;;  %v3351_v9 = vld [vmem:[%s4844_s1 + $0x18] sm:$0xff]   ;;  %v3353_v17 = vld [vmem:[%s4844_s1 + $0x10] sm:$0xff]  }
  0x1a   : > { %s3274_s9 = smul.u32 432, %s277_s17  ;;  %v3354_v18 = vld [vmem:[%s4844_s1 + $0x48] sm:$0xff]   ;;  %v3356_v20 = vld [vmem:[%s4844_s1 + $0x40] sm:$0xff]   ;;  %v3358_v26 = vld [vmem:[%s4844_s1 + $0xf8] sm:$0xff]   ;;  %s4721_s17 = scalar_lea.hbm %s4846_s3, %s2737_s14 }
  0x1b   : > { %v3355_v19 = vld [vmem:[%s4844_s1 + $0x8] sm:$0xff]   ;;  %v3357_v21 = vld [vmem:[%s4844_s1] sm:$0xff]   ;;  %v3359_v27 = vld [vmem:[%s4844_s1 + $0x178] sm:$0xff]  }
  0x1c   : > { %2741 = vmatpush3.bf16.msra.mxu0 %v3345_v3  ;;  %3267 = vmatpush3.bf16.msra.mxu1 %v3345_v3  ;;  %s3674_s16 = scalar_lea.vmem %s4843_s0, %s3274_s9  ;;  %v3360_v30 = vld [vmem:[%s4844_s1 + $0xb8] sm:$0xff]   ;;  %v3362_v36 = vld [vmem:[%s4844_s1 + $0xf0] sm:$0xff]   ;;  %v3364_v45 = vld [vmem:[%s4844_s1 + $0xe8] sm:$0xff]   ;;  %s3548_s9 = smov [#allocation2]  }
  0x1d   : > { %2742 = vmatprep.subr.bf16.mxu0 %v3346_v4  ;;  %3260 = vmatprep.subr.bf16.mxu1 %v3346_v4  ;;  %v337_v11 = vld [vmem:[%s3674_s16 + $0x1] sm:$0xff]  ;;  %v338_v12 = vld [vmem:[%s3674_s16 + $0x9] sm:$0xff]  ;;  %v339_v28 = vld [vmem:[%s3674_s16 + $0x19] sm:$0xff]  ;;  %s3418_s10 = sshll.u32 %s3548_s9, 4  ;;  %s3419_s10 = int_to_ptr.vmem [resolvable:$false] %s3418_s10 }
  0x1e   : > { %v361_v13 = vld [vmem:[%s3674_s16 + $0x121] sm:$0xff]  ;;  %v369_v14 = vpack.c.bf16 %v338_v12, %v337_v11  ;;  %v362_v15 = vld [vmem:[%s3674_s16 + $0x129] sm:$0xff]  ;;  %v363_v31 = vld [vmem:[%s3674_s16 + $0x139] sm:$0xff]  ;;  %s3420_s11 = scalar_lea.vmem %s3419_s10, 8192 }
  0x1f   : > { %v381_v16 = vpack.c.bf16 %v362_v15, %v361_v13  ;;  %v289_v22 = vld [vmem:[%s3674_s16] sm:$0xff]  ;;  %v290_v23 = vld [vmem:[%s3674_s16 + $0x8] sm:$0xff]  ;;  %v3361_v35 = vld [vmem:[%s4844_s1 + $0x138] sm:$0xff]  }
  0x20   : > { %2743 = vmatpush3.bf16.msra.mxu0 %v3347_v5  ;;  %3268 = vmatpush3.bf16.msra.mxu1 %v3347_v5  ;;  %v313_v24 = vld [vmem:[%s3674_s16 + $0x120] sm:$0xff]  ;;  %v314_v25 = vld [vmem:[%s3674_s16 + $0x128] sm:$0xff]  ;;  %v321_v32 = vpack.c.bf16 %v290_v23, %v289_v22  ;;  %v3363_v38 = vld [vmem:[%s4844_s1 + $0xb0] sm:$0xff]  }
  0x21   : > { %2744 = vmatprep.subr.bf16.mxu0 %v3348_v6  ;;  %3261 = vmatprep.subr.bf16.mxu1 %v3348_v6  ;;  %v340_v29 = vld [vmem:[%s3674_s16 + $0x21] sm:$0xff]  ;;  %v3717_v33 = vpack.c.bf16 %v314_v25, %v313_v24  ;;  %v291_v40 = vld [vmem:[%s3674_s16 + $0x18] sm:$0xff]  ;;  %v3367_v42 = vld [vmem:[%s4844_s1 + $0x170] sm:$0xff]  }
  0x22   : > { %1338 = vmatprep.mubr.bf16.mxu0 %v369_v14  ;;  %1434 = vmatprep.mubr.bf16.mxu1 %v381_v16  ;;  %v364_v34 = vld [vmem:[%s3674_s16 + $0x141] sm:$0xff]  ;;  %v3726_v37 = vpack.c.bf16 %v340_v29, %v339_v28  ;;  %v315_v43 = vld [vmem:[%s3674_s16 + $0x138] sm:$0xff]  ;;  %v3369_v46 = vld [vmem:[%s4844_s1 + $0x130] sm:$0xff]  }
  0x23   : > { %v382_v39 = vpack.c.bf16 %v364_v34, %v363_v31  ;;  %v292_v41 = vld [vmem:[%s3674_s16 + $0x20] sm:$0xff]  ;;  %v341_v47 = vld [vmem:[%s3674_s16 + $0x31] sm:$0xff]  ;;  %v3365_v53 = vld [vmem:[%s4844_s1 + $0xa8] sm:$0xff]  }
  0x24   : > { %2745 = vmatpush3.bf16.msra.mxu0 %v3349_v7  ;;  %3269 = vmatpush3.bf16.msra.mxu1 %v3349_v7  ;;  %v316_v44 = vld [vmem:[%s3674_s16 + $0x140] sm:$0xff]  ;;  %v365_v49 = vld [vmem:[%s3674_s16 + $0x151] sm:$0xff]  ;;  %v3750_v51 = vpack.c.bf16 %v292_v41, %v291_v40  ;;  %v343_v63 = vld [vmem:[%s3674_s16 + $0x49] sm:$0xff] }
  0x25   : > { %2746 = vmatprep.subr.bf16.mxu0 %v3350_v8  ;;  %3262 = vmatprep.subr.bf16.mxu1 %v3350_v8  ;;  %v342_v48 = vld [vmem:[%s3674_s16 + $0x39] sm:$0xff]  ;;  %v3752_v52 = vpack.c.bf16 %v316_v44, %v315_v43  ;;  %v293_v58 = vld [vmem:[%s3674_s16 + $0x30] sm:$0xff]  ;;  %v3375_v2 = vld [vmem:[%s4844_s1 + $0x168] sm:$0xff]  }
  0x26   : > { %v366_v50 = vld [vmem:[%s3674_s16 + $0x159] sm:$0xff]  ;;  %v3757_v54 = vpack.c.bf16 %v342_v48, %v341_v47  ;;  %v317_v60 = vld [vmem:[%s3674_s16 + $0x150] sm:$0xff]  ;;  %v3377_v6 = vld [vmem:[%s4844_s1 + $0x128] sm:$0xff]  }
  0x27   : > { %v3366_v55 = vld [vmem:[%s4844_s1 + $0xe0] sm:$0xff]   ;;  %v383_v56 = vpack.c.bf16 %v366_v50, %v365_v49  ;;  %v294_v59 = vld [vmem:[%s3674_s16 + $0x38] sm:$0xff]  ;;  %v367_v1 = vld [vmem:[%s3674_s16 + $0x169] sm:$0xff] }
  0x28   : > { %2747 = vmatpush3.bf16.msra.mxu0 %v3351_v9  ;;  %3270 = vmatpush3.bf16.msra.mxu1 %v3351_v9  ;;  %v3368_v57 = vld [vmem:[%s4844_s1 + $0xa0] sm:$0xff]   ;;  %v318_v61 = vld [vmem:[%s3674_s16 + $0x158] sm:$0xff]  ;;  %v3782_v4 = vpack.c.bf16 %v294_v59, %v293_v58  ;;  %v3372_v9 = vld [vmem:[%s4844_s1 + $0xd0] sm:$0xff]  }
  0x29   : > { %2748 = vmatprep.subr.bf16.mxu0 %v3352_v10  ;;  %3263 = vmatprep.subr.bf16.mxu1 %v3352_v10  ;;  %v3370_v62 = vld [vmem:[%s4844_s1 + $0xd8] sm:$0xff]   ;;  %v3784_v5 = vpack.c.bf16 %v318_v61, %v317_v60  ;;  %v3373_v11 = vld [vmem:[%s4844_s1 + $0x90] sm:$0xff]   ;;  %v295_v12 = vld [vmem:[%s3674_s16 + $0x48] sm:$0xff] }
  0x2a   : > { %v344_v0 = vld [vmem:[%s3674_s16 + $0x51] sm:$0xff]  ;;  %v319_v14 = vld [vmem:[%s3674_s16 + $0x168] sm:$0xff]  ;;  %v3383_v22 = vld [vmem:[%s4844_s1 + $0x120] sm:$0xff]  }
  0x2b   : > { %v368_v3 = vld [vmem:[%s3674_s16 + $0x171] sm:$0xff]  ;;  %v3792_v8 = vpack.c.bf16 %v344_v0, %v343_v63  ;;  %v3374_v16 = vld [vmem:[%s4844_s1 + $0xc8] sm:$0xff]   ;;  %v3378_v25 = vld [vmem:[%s4844_s1 + $0xc0] sm:$0xff]  }
  0x2c   : > { %2749 = vmatpush3.bf16.msra.mxu0 %v3353_v17  ;;  %3271 = vmatpush3.bf16.msra.mxu1 %v3353_v17  ;;  %v3371_v7 = vld [vmem:[%s4844_s1 + $0x98] sm:$0xff]   ;;  %v384_v10 = vpack.c.bf16 %v368_v3, %v367_v1  ;;  %v296_v13 = vld [vmem:[%s3674_s16 + $0x50] sm:$0xff]  ;;  %v345_v17 = vld [vmem:[%s3674_s16 + $0x61] sm:$0xff] }
  0x2d   : > { %2750 = vmatprep.subr.bf16.mxu0 %v3354_v18  ;;  %3264 = vmatprep.subr.bf16.mxu1 %v3354_v18  ;;  %v320_v15 = vld [vmem:[%s3674_s16 + $0x170] sm:$0xff]  ;;  %v3376_v23 = vld [vmem:[%s4844_s1 + $0x88] sm:$0xff]   ;;  %v3380_v31 = vld [vmem:[%s4844_s1 + $0x1f8] sm:$0xff]  }
  0x2e   : > { %v346_v18 = vld [vmem:[%s3674_s16 + $0x69] sm:$0xff]  ;;  %v3384_v34 = vld [vmem:[%s4844_s1 + $0x158] sm:$0xff]   ;;  %v3394_v3 = vld [vmem:[%s4844_s1 + $0x1e0] sm:$0xff]  }
  0x2f   : > { %v3825_v24 = vpack.c.bf16 %v346_v18, %v345_v17  ;;  %v298_v28 = vld [vmem:[%s3674_s16 + $0x68] sm:$0xff]  ;;  %v3381_v40 = vld [vmem:[%s4844_s1 + $0x1b8] sm:$0xff]   ;;  %v3388_v44 = vld [vmem:[%s4844_s1 + $0x150] sm:$0xff]  }
  0x30   : > { %2751 = vmatpush3.bf16.msra.mxu0 %v3355_v19  ;;  %3272 = vmatpush3.bf16.msra.mxu1 %v3355_v19  ;;  %v3382_v19 = vld [vmem:[%s4844_s1 + $0x160] sm:$0xff]   ;;  %v299_v43 = vld [vmem:[%s3674_s16 + $0x78] sm:$0xff]  ;;  %v3387_v49 = vld [vmem:[%s4844_s1 + $0x1b0] sm:$0xff]  }
  0x31   : > { %2752 = vmatprep.subr.bf16.mxu0 %v3356_v20  ;;  %3265 = vmatprep.subr.bf16.mxu1 %v3356_v20  ;;  %v3815_v20 = vpack.c.bf16 %v296_v13, %v295_v12  ;;  %v385_v29 = vld [vmem:[%s3674_s16 + $0x2] sm:$0xff]  ;;  %v387_v47 = vld [vmem:[%s3674_s16 + $0x1a] sm:$0xff]  ;;  %v349_v50 = vld [vmem:[%s3674_s16 + $0x91] sm:$0xff] }
  0x32   : > { %v388_v48 = vld [vmem:[%s3674_s16 + $0x22] sm:$0xff]  ;;  %v301_v60 = vld [vmem:[%s3674_s16 + $0x90] sm:$0xff]  ;;  %v390_v0 = vld [vmem:[%s3674_s16 + $0x3a] sm:$0xff] }
  0x33   : > { %v3391_v58 = vld [vmem:[%s4844_s1 + $0x1a8] sm:$0xff]   ;;  %v389_v63 = vld [vmem:[%s3674_s16 + $0x32] sm:$0xff]  ;;  %v3397_v12 = vld [vmem:[%s4844_s1 + $0x100] sm:$0xff]  }
  0x34   : > { %2753 = vmatpush3.bf16.msra.mxu0 %v3357_v21  ;;  %3273 = vmatpush3.bf16.msra.mxu1 %v3357_v21  ;;  %v3817_v21 = vpack.c.bf16 %v320_v15, %v319_v14  ;;  %v3392_v59 = vld [vmem:[%s4844_s1 + $0x148] sm:$0xff]   ;;  %v304_v14 = vld [vmem:[%s3674_s16 + $0xb0] sm:$0xff] }
  0x35   : > { %2850 = vmatprep.subr.bf16.mxu1 %v3358_v26  ;;  %2962 = vmatprep.subr.bf16.mxu0 %v3359_v27  ;;  %v3379_v26 = vld [vmem:[%s4844_s1 + $0x80] sm:$0xff]   ;;  %v3393_v61 = vld [vmem:[%s4844_s1 + $0x108] sm:$0xff]  }
  0x36   : > { %v297_v27 = vld [vmem:[%s3674_s16 + $0x60] sm:$0xff]  ;;  %v351_v1 = vld [vmem:[%s3674_s16 + $0xa9] sm:$0xff] }
  0x37   : > { %1339 = vmatmul.mubr.bf16.vlgmr.msra.gmra.mxu0 %v321_v32  ;;  %1435 = vmatmul.mubr.bf16.vlgmr.msra.gmra.mxu1 %v3717_v33  ;;  %v347_v32 = vld [vmem:[%s3674_s16 + $0x79] sm:$0xff]  ;;  %v303_v13 = vld [vmem:[%s3674_s16 + $0xa8] sm:$0xff] }
  0x38   : > { %2851 = vmatpush3.bf16.msra.mxu1 %v3360_v30  ;;  %2963 = vmatpush3.bf16.msra.mxu0 %v3361_v35  ;;  %v386_v30 = vld [vmem:[%s3674_s16 + $0xa] sm:$0xff]  ;;  %v348_v35 = vld [vmem:[%s3674_s16 + $0x81] sm:$0xff] }
  0x39   : > { %2852 = vmatprep.subr.bf16.mxu1 %v3362_v36  ;;  %1346 = vmatprep.mubr.bf16.mxu0 %v3726_v37  ;;  %v3386_v36 = vld [vmem:[%s4844_s1 + $0x118] sm:$0xff]   ;;  %v3857_v41 = vpack.c.bf16 %v348_v35, %v347_v32  ;;  %v391_v15 = vld [vmem:[%s3674_s16 + $0x4a] sm:$0xff]  ;;  %v353_v17 = vld [vmem:[%s3674_s16 + $0xc1] sm:$0xff] }
  0x3a   : > { %1442 = vmatprep.mubr.bf16.mxu1 %v382_v39  ;;  %2964 = vmatprep.subr.bf16.mxu0 %v3367_v42  ;;  %v417_v39 = vpack.c.bf16 %v386_v30, %v385_v29  ;;  %v3385_v42 = vld [vmem:[%s4844_s1 + $0x1f0] sm:$0xff]   ;;  %v305_v29 = vld [vmem:[%s3674_s16 + $0xc0] sm:$0xff]  ;;  %v306_v30 = vld [vmem:[%s3674_s16 + $0xc8] sm:$0xff] }
  0x3b   : > { %v354_v18 = vld [vmem:[%s3674_s16 + $0xc9] sm:$0xff]  ;;  %v355_v35 = vld [vmem:[%s3674_s16 + $0xd9] sm:$0xff] }
  0x3c   : > { %2853 = vmatpush3.bf16.msra.mxu1 %v3363_v38  ;;  %2965 = vmatpush3.bf16.msra.mxu0 %v3369_v46  ;;  %v3852_v38 = vpack.c.bf16 %v298_v28, %v297_v27  ;;  %v3389_v46 = vld [vmem:[%s4844_s1 + $0x110] sm:$0xff]   ;;  %v3951_v27 = vpack.c.bf16 %v354_v18, %v353_v17  ;;  %v401_v18 = vld [vmem:[%s3674_s16 + $0xc2] sm:$0xff] }
  0x3d   : > { %2854 = vmatprep.subr.bf16.mxu1 %v3364_v45  ;;  %2966 = vmatprep.subr.bf16.mxu0 %v3375_v2  ;;  %v300_v45 = vld [vmem:[%s3674_s16 + $0x80] sm:$0xff]  ;;  %v352_v2 = vld [vmem:[%s3674_s16 + $0xb1] sm:$0xff] }
  0x3e   : > { %v3401_v28 = vld [vmem:[%s4844_s1 + $0x1d0] sm:$0xff]  }
  0x3f   : > { %1347 = vmatmul.mubr.bf16.gmra.mxu0 %v3750_v51  ;;  %1443 = vmatmul.mubr.bf16.gmra.mxu1 %v3752_v52  ;;  %v3403_v32 = vld [vmem:[%s4844_s1 + $0x190] sm:$0xff]  }
  0x40   : > { %2855 = vmatpush3.bf16.msra.mxu1 %v3365_v53  ;;  %1354 = vmatprep.mubr.bf16.mxu0 %v3757_v54  ;;  %v3390_v53 = vld [vmem:[%s4844_s1 + $0x1e8] sm:$0xff]  }
  0x41   : > { %2856 = vmatprep.subr.bf16.mxu1 %v3366_v55  ;;  %1450 = vmatprep.mubr.bf16.mxu1 %v383_v56  ;;  %v3883_v55 = vpack.c.bf16 %v300_v45, %v299_v43  ;;  %v3885_v56 = vpack.c.bf16 %v388_v48, %v387_v47  ;;  %v3406_v43 = vld [vmem:[%s4844_s1 + $0x188] sm:$0xff]   ;;  %v307_v45 = vld [vmem:[%s3674_s16 + $0xd8] sm:$0xff]  ;;  %v308_v47 = vld [vmem:[%s3674_s16 + $0xe0] sm:$0xff] }
  0x42   : > { %2967 = vmatpush3.bf16.msra.mxu0 %v3377_v6  ;;  %v395_v48 = vld [vmem:[%s3674_s16 + $0x7a] sm:$0xff] }
  0x43   : > { %2968 = vmatprep.subr.bf16.mxu0 %v3382_v19  ;;  %v3398_v19 = vld [vmem:[%s4844_s1 + $0x1d8] sm:$0xff]  }
  0x44   : > { %2857 = vmatpush3.bf16.msra.mxu1 %v3368_v57 }
  0x45   : > { %2858 = vmatprep.subr.bf16.mxu1 %v3370_v62  ;;  %v302_v62 = vld [vmem:[%s3674_s16 + $0x98] sm:$0xff] }
  0x46   : > { %2969 = vmatpush3.bf16.msra.mxu0 %v3383_v22  ;;  %v3911_v6 = vpack.c.bf16 %v302_v62, %v301_v60  ;;  %v3942_v22 = vld [vmem:[%s4844_s1 + $0x238] sm:$0xff]  }
  0x47   : > { %1355 = vmatmul.mubr.bf16.gmra.mxu0 %v3782_v4  ;;  %1451 = vmatmul.mubr.bf16.gmra.mxu1 %v3784_v5  ;;  %v310_v62 = vld [vmem:[%s3674_s16 + $0xf8] sm:$0xff] }
  0x48   : > { %2859 = vmatpush3.bf16.msra.mxu1 %v3371_v7  ;;  %1362 = vmatprep.mubr.bf16.mxu0 %v3792_v8  ;;  %v3913_v7 = vpack.c.bf16 %v390_v0, %v389_v63  ;;  %v397_v63 = vld [vmem:[%s3674_s16 + $0x92] sm:$0xff]  ;;  %v398_v0 = vld [vmem:[%s3674_s16 + $0x9a] sm:$0xff] }
  0x49   : > { %2860 = vmatprep.subr.bf16.mxu1 %v3372_v9  ;;  %1458 = vmatprep.mubr.bf16.mxu1 %v384_v10  ;;  %v3395_v9 = vld [vmem:[%s4844_s1 + $0x1a0] sm:$0xff]   ;;  %v3918_v10 = vpack.c.bf16 %v352_v2, %v351_v1  ;;  %v359_v1 = vld [vmem:[%s3674_s16 + $0x109] sm:$0xff]  ;;  %v360_v2 = vld [vmem:[%s3674_s16 + $0x111] sm:$0xff] }
  0x4a   : > { %2970 = vmatprep.subr.bf16.mxu0 %v3384_v34  ;;  %v394_v34 = vld [vmem:[%s3674_s16 + $0x6a] sm:$0xff] }
  0x4b   : > { %2971 = vmatpush3.bf16.msra.mxu0 %v3386_v36  ;;  %v356_v36 = vld [vmem:[%s3674_s16 + $0xe1] sm:$0xff] }
  0x4c   : > { %2861 = vmatpush3.bf16.msra.mxu1 %v3373_v11  ;;  %2972 = vmatprep.subr.bf16.mxu0 %v3388_v44  ;;  %v3396_v11 = vld [vmem:[%s4844_s1 + $0x140] sm:$0xff]   ;;  %v3980_v44 = vpack.c.bf16 %v356_v36, %v355_v35  ;;  %v3411_v35 = vld [vmem:[%s4844_s1 + $0x210] sm:$0xff]  }
  0x4d   : > { %2862 = vmatprep.subr.bf16.mxu1 %v3374_v16  ;;  %v392_v16 = vld [vmem:[%s3674_s16 + $0x52] sm:$0xff] }
  0x4e   : > { %v408_v36 = vld [vmem:[%s3674_s16 + $0x112] sm:$0xff] }
  0x4f   : > { %1363 = vmatmul.mubr.bf16.gmra.mxu0 %v3815_v20  ;;  %1459 = vmatmul.mubr.bf16.gmra.mxu1 %v3817_v21 }
  0x50   : > { %2863 = vmatpush3.bf16.msra.mxu1 %v3376_v23  ;;  %1370 = vmatprep.mubr.bf16.mxu0 %v3825_v24  ;;  %v3944_v23 = vpack.c.bf16 %v304_v14, %v303_v13  ;;  %v312_v13 = vld [vmem:[%s3674_s16 + $0x110] sm:$0xff] }
  0x51   : > { %2864 = vmatprep.subr.bf16.mxu1 %v3378_v25  ;;  %1499 = vmatprep.mubr.bf16.mxu1 %v3750_v51  ;;  %v350_v51 = vld [vmem:[%s3674_s16 + $0x99] sm:$0xff]  ;;  %v3946_v25 = vpack.c.bf16 %v392_v16, %v391_v15  ;;  %v399_v14 = vld [vmem:[%s3674_s16 + $0xaa] sm:$0xff] }
  0x52   : > { %2973 = vmatpush3.bf16.msra.mxu0 %v3389_v46  ;;  %v3887_v57 = vpack.c.bf16 %v350_v51, %v349_v50  ;;  %v3407_v46 = vld [vmem:[%s4844_s1 + $0x1c0] sm:$0xff]   ;;  %v357_v51 = vld [vmem:[%s3674_s16 + $0xf1] sm:$0xff] }
  0x53   : > { %2974 = vmatprep.subr.bf16.mxu0 %v3392_v59  ;;  %v3409_v50 = vld [vmem:[%s4844_s1 + $0x180] sm:$0xff]   ;;  %v400_v15 = vld [vmem:[%s3674_s16 + $0xb2] sm:$0xff] }
  0x54   : > { %2865 = vmatpush3.bf16.msra.mxu1 %v3379_v26  ;;  %v3400_v26 = vld [vmem:[%s4844_s1 + $0x198] sm:$0xff]   ;;  %v4030_v17 = vpack.c.bf16 %v400_v15, %v399_v14 }
  0x55   : > { %3074 = vmatprep.subr.bf16.mxu1 %v3380_v31  ;;  %v393_v31 = vld [vmem:[%s3674_s16 + $0x62] sm:$0xff] }
  0x56   : > { %2975 = vmatpush3.bf16.msra.mxu0 %v3393_v61  ;;  %v309_v61 = vld [vmem:[%s3674_s16 + $0xf0] sm:$0xff] }
  0x57   : > { %1371 = vmatmul.mubr.bf16.gmra.mxu0 %v3852_v38  ;;  %1500 = vmatmul.mubr.bf16.vlgmr.msra.gmra.mxu1 %v417_v39  ;;  %v3404_v39 = vld [vmem:[%s4844_s1 + $0x1c8] sm:$0xff]  }
  0x58   : > { %3075 = vmatpush3.bf16.msra.mxu1 %v3381_v40  ;;  %1378 = vmatprep.mubr.bf16.mxu0 %v3857_v41  ;;  %v3973_v40 = vpack.c.bf16 %v306_v30, %v305_v29  ;;  %v403_v29 = vld [vmem:[%s3674_s16 + $0xda] sm:$0xff]  ;;  %v3405_v30 = vld [vmem:[%s4844_s1 + $0x228] sm:$0xff]  }
  0x59   : > { %1507 = vmatprep.mubr.bf16.mxu1 %v3782_v4  ;;  %3076 = vmatprep.subr.bf16.mxu1 %v3385_v42  ;;  %v3975_v42 = vpack.c.bf16 %v394_v34, %v393_v31 }
  0x5a   : > { %2976 = vmatprep.subr.bf16.mxu0 %v3396_v11  ;;  %v4018_v11 = vpack.c.bf16 %v360_v2, %v359_v1  ;;  %v2523_v1 = vld [vmem:[%s3674_s16 + $0x151] sm:$0xff] }
  0x5b   : > { %2977 = vmatpush3.bf16.msra.mxu0 %v3397_v12  ;;  %v311_v12 = vld [vmem:[%s3674_s16 + $0x108] sm:$0xff] }
  0x5c   : > { %3077 = vmatpush3.bf16.msra.mxu1 %v3387_v49  ;;  %3210 = vmatprep.subr.bf16.mxu0 %v3942_v22  ;;  %v396_v49 = vld [vmem:[%s3674_s16 + $0x82] sm:$0xff]  ;;  %v4028_v16 = vpack.c.bf16 %v312_v13, %v311_v12 }
  0x5d   : > { %3078 = vmatprep.subr.bf16.mxu1 %v3390_v53  ;;  %v358_v53 = vld [vmem:[%s3674_s16 + $0xf9] sm:$0xff]  ;;  %v4000_v59 = vpack.c.bf16 %v396_v49, %v395_v48 }
  0x5e   : > { %v4002_v60 = vpack.c.bf16 %v358_v53, %v357_v51  ;;  %v413_v49 = vld [vmem:[%s3674_s16 + $0x152] sm:$0xff]  ;;  %v2495_v51 = vld [vmem:[%s3674_s16 + $0x180] sm:$0xff] }
  0x5f   : > { %1379 = vmatmul.mubr.bf16.gmra.mxu0 %v3883_v55  ;;  %1508 = vmatmul.mubr.bf16.gmra.mxu1 %v3885_v56 }
  0x60   : > { %1386 = vmatprep.mubr.bf16.mxu0 %v3887_v57  ;;  %1515 = vmatprep.mubr.bf16.mxu1 %v3815_v20 }
  0x61   : > { %3079 = vmatpush3.bf16.msra.mxu1 %v3391_v58  ;;  %v3998_v58 = vpack.c.bf16 %v308_v47, %v307_v45  ;;  %v410_v45 = vld [vmem:[%s3674_s16 + $0x12a] sm:$0xff]  ;;  %v412_v47 = vld [vmem:[%s3674_s16 + $0x142] sm:$0xff] }
  0x62   : > { %3080 = vmatprep.subr.bf16.mxu1 %v3394_v3  ;;  %v4014_v3 = vpack.c.bf16 %v310_v62, %v309_v61  ;;  %v415_v62 = vld [vmem:[%s3674_s16 + $0x16a] sm:$0xff] }
  0x65   : > { %3081 = vmatpush3.bf16.msra.mxu1 %v3395_v9  ;;  %v4016_v9 = vpack.c.bf16 %v398_v0, %v397_v63 }
  0x66   : > { %3082 = vmatprep.subr.bf16.mxu1 %v3398_v19  ;;  %v402_v19 = vld [vmem:[%s3674_s16 + $0xca] sm:$0xff] }
  0x67   : > { %1387 = vmatmul.mubr.bf16.gmra.mxu0 %v3911_v6  ;;  %1516 = vmatmul.mubr.bf16.gmra.mxu1 %v3913_v7 }
  0x68   : > { %1394 = vmatprep.mubr.bf16.mxu0 %v3918_v10  ;;  %1523 = vmatprep.mubr.bf16.mxu1 %v3852_v38 }
  0x69   : > { %3083 = vmatpush3.bf16.msra.mxu1 %v3400_v26  ;;  %v4038_v26 = vpack.c.bf16 %v402_v19, %v401_v18 }
  0x6a   : > { %3084 = vmatprep.subr.bf16.mxu1 %v3401_v28  ;;  %v3402_v28 = vld [vmem:[%s4844_s1 + $0x230] sm:$0xff]  }
  0x6d   : > { %3085 = vmatpush3.bf16.msra.mxu1 %v3403_v32  ;;  %v3410_v32 = vld [vmem:[%s4844_s1 + $0x218] sm:$0xff]  }
  0x6e   : > { %3086 = vmatprep.subr.bf16.mxu1 %v3404_v39  ;;  %v3412_v39 = vld [vmem:[%s4844_s1 + $0x208] sm:$0xff]  }
  0x6f   : > { %1395 = vmatmul.mubr.bf16.gmra.mxu0 %v3944_v23  ;;  %1524 = vmatmul.mubr.bf16.gmra.mxu1 %v3946_v25 }
  0x70   : > { %1402 = vmatprep.mubr.bf16.mxu0 %v3951_v27  ;;  %1531 = vmatprep.mubr.bf16.mxu1 %v3883_v55 }
  0x71   : > { %3087 = vmatpush3.bf16.msra.mxu1 %v3406_v43 }
  0x72   : > { %3088 = vmatprep.subr.bf16.mxu1 %v3407_v46 }
  0x75   : > { %3089 = vmatpush3.bf16.msra.mxu1 %v3409_v50  ;;  %v414_v50 = vld [vmem:[%s3674_s16 + $0x15a] sm:$0xff] }
  0x76   : > { %v4110_v53 = vpack.c.bf16 %v414_v50, %v413_v49 }
  0x77   : > { %1403 = vmatmul.mubr.bf16.gmra.mxu0 %v3973_v40  ;;  %1532 = vmatmul.mubr.bf16.gmra.mxu1 %v3975_v42 }
  0x78   : > { %1410 = vmatprep.mubr.bf16.mxu0 %v3980_v44  ;;  %1539 = vmatprep.mubr.bf16.mxu1 %v3911_v6 }
  0x7f   : > { %1411 = vmatmul.mubr.bf16.gmra.mxu0 %v3998_v58  ;;  %1540 = vmatmul.mubr.bf16.gmra.mxu1 %v4000_v59 }
  0x80   : > { %1418 = vmatprep.mubr.bf16.mxu0 %v4002_v60  ;;  %1547 = vmatprep.mubr.bf16.mxu1 %v3944_v23 }
  0x87   : > { %1419 = vmatmul.mubr.bf16.gmra.mxu0 %v4014_v3  ;;  %1548 = vmatmul.mubr.bf16.gmra.mxu1 %v4016_v9 }
  0x88   : > { %1426 = vmatprep.mubr.bf16.mxu0 %v4018_v11  ;;  %1555 = vmatprep.mubr.bf16.mxu1 %v3973_v40 }
  0x8f   : > { %1427 = vmatmul.mubr.bf16.gmra.mxu0 %v4028_v16  ;;  %1556 = vmatmul.mubr.bf16.gmra.mxu1 %v4030_v17 }
  0x90   : > { %1563 = vmatprep.mubr.bf16.mxu1 %v3998_v58  ;;  %1660 = vmatprep.mubr.bf16.mxu0 %v3885_v56  ;;  %v404_v56 = vld [vmem:[%s3674_s16 + $0xe2] sm:$0xff] }
  0x91   : > { %v4053_v31 = vpack.c.bf16 %v404_v56, %v403_v29 }
  0x97   : > { %1564 = vmatmul.mubr.bf16.gmra.mxu1 %v4038_v26  ;;  %1661 = vmatmul.mubr.bf16.vlgmr.msra.gmra.mxu0 %v3726_v37  ;;  %v3408_v37 = vld [vmem:[%s4844_s1 + $0x220] sm:$0xff]  }
  0x98   : > { %3211 = vmatpush3.bf16.msra.mxu0 %v3942_v22  ;;  %1571 = vmatprep.mubr.bf16.mxu1 %v4014_v3  ;;  %v406_v22 = vld [vmem:[%s3674_s16 + $0xfa] sm:$0xff] }
  0x99   : > { %1668 = vmatprep.mubr.bf16.mxu0 %v3913_v7  ;;  %3212 = vmatprep.subr.bf16.mxu0 %v3402_v28  ;;  %v405_v7 = vld [vmem:[%s3674_s16 + $0xf2] sm:$0xff] }
  0x9a   : > { %v4067_v34 = vpack.c.bf16 %v406_v22, %v405_v7 }
  0x9c   : > { %3213 = vmatpush3.bf16.msra.mxu0 %v3402_v28 }
  0x9d   : > { %3214 = vmatprep.subr.bf16.mxu0 %v3405_v30 }
  0x9f   : > { %1572 = vmatmul.mubr.bf16.gmra.mxu1 %v4053_v31  ;;  %1669 = vmatmul.mubr.bf16.gmra.mxu0 %v3757_v54 }
  0xa0   : > { %1579 = vmatprep.mubr.bf16.mxu1 %v4028_v16  ;;  %1676 = vmatprep.mubr.bf16.mxu0 %v3946_v25  ;;  %v407_v25 = vld [vmem:[%s3674_s16 + $0x10a] sm:$0xff] }
  0xa1   : > { %3215 = vmatpush3.bf16.msra.mxu0 %v3405_v30  ;;  %v4081_v43 = vpack.c.bf16 %v408_v36, %v407_v25  ;;  %v2525_v30 = vld [vmem:[%s3674_s16 + $0x169] sm:$0xff] }
  0xa2   : > { %3216 = vmatprep.subr.bf16.mxu0 %v3408_v37 }
  0xa5   : > { %3217 = vmatpush3.bf16.msra.mxu0 %v3408_v37  ;;  %v2526_v37 = vld [vmem:[%s3674_s16 + $0x171] sm:$0xff] }
  0xa6   : > { %3218 = vmatprep.subr.bf16.mxu0 %v3410_v32 }
  0xa7   : > { %1580 = vmatmul.mubr.bf16.gmra.mxu1 %v4067_v34  ;;  %1677 = vmatmul.mubr.bf16.gmra.mxu0 %v3792_v8 }
  0xa8   : > { %1587 = vmatprep.mubr.bf16.mxu1 %v3717_v33  ;;  %1684 = vmatprep.mubr.bf16.mxu0 %v3975_v42  ;;  %v3413_v33 = vld [vmem:[%s4844_s1 + $0x200] sm:$0xff]  }
  0xa9   : > { %3219 = vmatpush3.bf16.msra.mxu0 %v3410_v32  ;;  %v409_v42 = vld [vmem:[%s3674_s16 + $0x122] sm:$0xff] }
  0xaa   : > { %3220 = vmatprep.subr.bf16.mxu0 %v3411_v35  ;;  %v4092_v46 = vpack.c.bf16 %v410_v45, %v409_v42  ;;  %v2559_v32 = vld [vmem:[%s3674_s16 + $0x182] sm:$0xff]  ;;  %v4178_v42 = vpack.c.bf16 %v2526_v37, %v2525_v30  ;;  %v2630_v37 = vld [vmem:[%s3674_s16 + $0x6a] sm:$0xff] }
  0xab   : > { %v2629_v30 = vld [vmem:[%s3674_s16 + $0x62] sm:$0xff] }
  0xad   : > { %3221 = vmatpush3.bf16.msra.mxu0 %v3411_v35  ;;  %v2560_v35 = vld [vmem:[%s3674_s16 + $0x18a] sm:$0xff] }
  0xae   : > { %3222 = vmatprep.subr.bf16.mxu0 %v3412_v39 }
  0xaf   : > { %1588 = vmatmul.mubr.bf16.gmra.mxu1 %v4081_v43  ;;  %1685 = vmatmul.mubr.bf16.gmra.mxu0 %v3825_v24 }
  0xb0   : > { %1595 = vmatprep.mubr.bf16.mxu1 %v3752_v52  ;;  %1692 = vmatprep.mubr.bf16.mxu0 %v4000_v59  ;;  %v411_v52 = vld [vmem:[%s3674_s16 + $0x13a] sm:$0xff] }
  0xb1   : > { %3223 = vmatpush3.bf16.msra.mxu0 %v3412_v39  ;;  %v4100_v48 = vpack.c.bf16 %v412_v47, %v411_v52 }
  0xb2   : > { %3224 = vmatprep.subr.bf16.mxu0 %v3413_v33 }
  0xb5   : > { %3225 = vmatpush3.bf16.msra.mxu0 %v3413_v33 }
  0xb7   : > { %1596 = vmatmul.mubr.bf16.gmra.mxu1 %v4092_v46  ;;  %1693 = vmatmul.mubr.bf16.gmra.mxu0 %v3857_v41 }
  0xb8   : > { %1603 = vmatprep.mubr.bf16.mxu1 %v3784_v5  ;;  %1700 = vmatprep.mubr.bf16.mxu0 %v4016_v9  ;;  %v2496_v5 = vld [vmem:[%s3674_s16 + $0x188] sm:$0xff] }
  0xb9   : > { %v4112_v61 = vpack.c.bf16 %v2496_v5, %v2495_v51  ;;  %v2527_v51 = vld [vmem:[%s3674_s16 + $0x181] sm:$0xff]  ;;  %v2528_v5 = vld [vmem:[%s3674_s16 + $0x189] sm:$0xff] }
  0xbf   : > { %1604 = vmatmul.mubr.bf16.gmra.mxu1 %v4100_v48  ;;  %1701 = vmatmul.mubr.bf16.gmra.mxu0 %v3887_v57 }
  0xc0   : > { %1611 = vmatprep.mubr.bf16.mxu1 %v3817_v21  ;;  %1708 = vmatprep.mubr.bf16.mxu0 %v4030_v17  ;;  %v416_v21 = vld [vmem:[%s3674_s16 + $0x172] sm:$0xff] }
  0xc1   : > { %v4120_v63 = vpack.c.bf16 %v416_v21, %v415_v62 }
  0xc7   : > { %1612 = vmatmul.mubr.bf16.gmra.mxu1 %v4110_v53  ;;  %1709 = vmatmul.mubr.bf16.gmra.mxu0 %v3918_v10 }
  0xc8   : > { %1619 = vmatprep.mubr.bf16.mxu1 %v4112_v61  ;;  %1716 = vmatprep.mubr.bf16.mxu0 %v4038_v26 }
  0xcf   : > { %1620 = vmatmul.mubr.bf16.gmra.mxu1 %v4120_v63  ;;  %1717 = vmatmul.mubr.bf16.gmra.mxu0 %v3951_v27 }
  0xd0   : > { %1724 = vmatprep.mubr.bf16.mxu0 %v4053_v31  ;;  %1821 = vmatprep.mubr.bf16.mxu1 %v3757_v54  ;;  %v2519_v54 = vld [vmem:[%s3674_s16 + $0x121] sm:$0xff] }
  0xd7   : > { %1725 = vmatmul.mubr.bf16.gmra.mxu0 %v3980_v44  ;;  %1822 = vmatmul.mubr.bf16.vlgmr.msra.gmra.mxu1 %v3782_v4  ;;  %v2520_v4 = vld [vmem:[%s3674_s16 + $0x129] sm:$0xff] }
  0xd8   : > { %1732 = vmatprep.mubr.bf16.mxu0 %v4067_v34  ;;  %1829 = vmatprep.mubr.bf16.mxu1 %v3792_v8  ;;  %v4140_v8 = vpack.c.bf16 %v2520_v4, %v2519_v54  ;;  %v2625_v54 = vld [vmem:[%s3674_s16 + $0x32] sm:$0xff]  ;;  %v2626_v4 = vld [vmem:[%s3674_s16 + $0x3a] sm:$0xff] }
  0xdf   : > { %1733 = vmatmul.mubr.bf16.gmra.mxu0 %v4002_v60  ;;  %1830 = vmatmul.mubr.bf16.gmra.mxu1 %v3815_v20  ;;  %v2521_v20 = vld [vmem:[%s3674_s16 + $0x139] sm:$0xff] }
  0xe0   : > { %1740 = vmatprep.mubr.bf16.mxu0 %v4081_v43  ;;  %1837 = vmatprep.mubr.bf16.mxu1 %v3825_v24  ;;  %v2522_v24 = vld [vmem:[%s3674_s16 + $0x141] sm:$0xff] }
  0xe7   : > { %1741 = vmatmul.mubr.bf16.gmra.mxu0 %v4018_v11  ;;  %1838 = vmatmul.mubr.bf16.gmra.mxu1 %v3852_v38  ;;  %v4148_v38 = vpack.c.bf16 %v2522_v24, %v2521_v20 }
  0xe8   : > { %1748 = vmatprep.mubr.bf16.mxu0 %v4092_v46  ;;  %1845 = vmatprep.mubr.bf16.mxu1 %v3857_v41 }
  0xef   : > { %1749 = vmatmul.mubr.bf16.gmra.mxu0 %v4140_v8  ;;  %1846 = vmatmul.mubr.bf16.gmra.mxu1 %v3883_v55  ;;  %v2524_v55 = vld [vmem:[%s3674_s16 + $0x159] sm:$0xff] }
  0xf0   : > { %1756 = vmatprep.mubr.bf16.mxu0 %v4100_v48  ;;  %1853 = vmatprep.mubr.bf16.mxu1 %v3887_v57  ;;  %v4160_v18 = vpack.c.bf16 %v2524_v55, %v2523_v1  ;;  %v4198_v1 = vpack.c.bf16 %v2528_v5, %v2527_v51 }
  0xf7   : > { %v2754_v0 = vpop.f32.mrf.mxu0  ;;  %v2826_v41 = vpop.f32.mrf.mxu1  ;;  %1757 = vmatmul.mubr.bf16.gmra.mxu0 %v4148_v38  ;;  %1854 = vmatmul.mubr.bf16.gmra.mxu1 %v3911_v6 }
  0xf8   : > { %1764 = vmatprep.mubr.bf16.mxu0 %v4110_v53  ;;  %1861 = vmatprep.mubr.bf16.mxu1 %v3918_v10 }
  0xf9   : > { %v2755_v2 = vpop.f32.mrf.mxu0  ;;  %v2827_v12 = vpop.f32.mrf.mxu1 }
  0xfa   : > { %v4156_v57 = vadd.f32 %v2755_v2, %v2754_v0  ;;  %v4158_v13 = vadd.f32 %v2827_v12, %v2826_v41 }
  0xfb   : > { %v2757_v14 = vpop.f32.mrf.mxu0  ;;  %v2829_v15 = vpop.f32.mrf.mxu1 }
  0xfd   : > { %v2758_v6 = vpop.f32.mrf.mxu0  ;;  %v2830_v19 = vpop.f32.mrf.mxu1 }
  0xfe   : > { %v4162_v28 = vadd.f32 %v2758_v6, %v2757_v14  ;;  %v4164_v10 = vadd.f32 %v2830_v19, %v2829_v15  ;;  %v2627_v6 = vld [vmem:[%s3674_s16 + $0x4a] sm:$0xff]  ;;  %v2628_v19 = vld [vmem:[%s3674_s16 + $0x52] sm:$0xff] }
  0xff   : > { %v2760_v29 = vpop.f32.mrf.mxu0  ;;  %v2832_v56 = vpop.f32.mrf.mxu1  ;;  %1765 = vmatmul.mubr.bf16.gmra.mxu0 %v4160_v18  ;;  %1862 = vmatmul.mubr.bf16.gmra.mxu1 %v3944_v23  ;;  %v4180_v23 = vpack.c.bf16 %v2560_v35, %v2559_v32 }
 0x100   : > { %1772 = vmatprep.mubr.bf16.mxu0 %v4120_v63  ;;  %1869 = vmatprep.mubr.bf16.mxu1 %v3951_v27 }
 0x101   : > { %v2761_v7 = vpop.f32.mrf.mxu0  ;;  %v2833_v22 = vpop.f32.mrf.mxu1 }
 0x102   : > { %v4174_v25 = vadd.f32 %v2761_v7, %v2760_v29  ;;  %v4176_v36 = vadd.f32 %v2833_v22, %v2832_v56 }
 0x103   : > { %v2763_v39 = vpop.f32.mrf.mxu0  ;;  %v2835_v33 = vpop.f32.mrf.mxu1 }
 0x105   : > { %v2764_v27 = vpop.f32.mrf.mxu0  ;;  %v2836_v45 = vpop.f32.mrf.mxu1 }
 0x106   : > { %v4182_v52 = vadd.f32 %v2764_v27, %v2763_v39  ;;  %v4184_v47 = vadd.f32 %v2836_v45, %v2835_v33  ;;  %v708_v39 = vpack.c.bf16 %v2628_v19, %v2627_v6  ;;  %v709_v33 = vpack.c.bf16 %v2630_v37, %v2629_v30  ;;  %v2581_v19 = vld [vmem:[%s3674_s16 + $0x120] sm:$0xff] }
 0x107   : > { %v2766_v49 = vpop.f32.mrf.mxu0  ;;  %v2838_v50 = vpop.f32.mrf.mxu1  ;;  %1773 = vmatmul.mubr.bf16.gmra.mxu0 %v4178_v42  ;;  %1870 = vmatmul.mubr.bf16.gmra.mxu1 %v3973_v40  ;;  %v707_v40 = vpack.c.bf16 %v2626_v4, %v2625_v54 }
 0x108   : > { %1780 = vmatprep.mubr.bf16.mxu0 %v4180_v23  ;;  %1877 = vmatprep.mubr.bf16.mxu1 %v3980_v44 }
 0x109   : > { %v2767_v62 = vpop.f32.mrf.mxu0  ;;  %v2839_v21 = vpop.f32.mrf.mxu1 }
 0x10a   : > { %v4194_v20 = vadd.f32 %v2767_v62, %v2766_v49  ;;  %v4196_v24 = vadd.f32 %v2839_v21, %v2838_v50  ;;  %v4222_v49 = vld [vmem:[%s4845_s2] ss:$0 sm:$0xff] }
 0x10b   : > { %v2769_v0 = vpop.f32.mrf.mxu0  ;;  %v2841_v41 = vpop.f32.mrf.mxu1  ;;  %v1341_v21 = vadd.f32 %v4156_v57, %v4222_v49 }
 0x10d   : > { %v2770_v44 = vpop.f32.mrf.mxu0  ;;  %v2842_v55 = vpop.f32.mrf.mxu1 }
 0x10e   : > { %v4200_v2 = vadd.f32 %v2770_v44, %v2769_v0  ;;  %v4202_v12 = vadd.f32 %v2842_v55, %v2841_v41 }
 0x10f   : > { %v2772_v14 = vpop.f32.mrf.mxu0  ;;  %v2844_v15 = vpop.f32.mrf.mxu1  ;;  %1781 = vmatmul.mubr.bf16.gmra.mxu0 %v4198_v1  ;;  %1878 = vmatmul.mubr.bf16.gmra.mxu1 %v3998_v58 }
 0x110   : > { %1885 = vmatprep.mubr.bf16.mxu1 %v4002_v60  ;;  %3226 = vmatprep.mubr.bf16.mxu0 %v707_v40 }
 0x111   : > { %v2773_v29 = vpop.f32.mrf.mxu0  ;;  %v2845_v56 = vpop.f32.mrf.mxu1 }
 0x112   : > { %v4211_v7 = vadd.f32 %v2773_v29, %v2772_v14  ;;  %v4213_v22 = vadd.f32 %v2845_v56, %v2844_v15  ;;  %v2582_v29 = vld [vmem:[%s3674_s16 + $0x128] sm:$0xff] }
 0x113   : > { %v2775_v32 = vpop.f32.mrf.mxu0  ;;  %v2847_v35 = vpop.f32.mrf.mxu1 }
 0x115   : > { %v2776_v27 = vpop.f32.mrf.mxu0  ;;  %v2848_v45 = vpop.f32.mrf.mxu1 }
 0x116   : > { %v4215_v58 = vadd.f32 %v2776_v27, %v2775_v32  ;;  %v4217_v60 = vadd.f32 %v2848_v45, %v2847_v35 }
 0x117   : > { %v2778_v50 = vpop.f32.mrf.mxu0  ;;  %v2866_v51 = vpop.f32.mrf.mxu1  ;;  %1886 = vmatmul.mubr.bf16.gmra.mxu1 %v4014_v3  ;;  %3227 = vmatmul.mubr.bf16.vlgmr.msra.gmra.mxu0 %v708_v39 }
 0x118   : > { %1893 = vmatprep.mubr.bf16.mxu1 %v4018_v11  ;;  %3230 = vmatprep.mubr.bf16.mxu0 %v709_v33  ;;  %v1344_v11 = vadd.f32 %v4162_v28, %v4222_v49  ;;  %v1349_v28 = vadd.f32 %v4174_v25, %v4222_v49 }
 0x119   : > { %v2779_v5 = vpop.f32.mrf.mxu0  ;;  %v2867_v62 = vpop.f32.mrf.mxu1 }
 0x11a   : > { %v4228_v54 = vadd.f32 %v2779_v5, %v2778_v50  ;;  %v2868_v4 = vadd.f32 %v2867_v62, %v2866_v51  ;;  %v2583_v5 = vld [vmem:[%s3674_s16 + $0x138] sm:$0xff]  ;;  %v2584_v62 = vld [vmem:[%s3674_s16 + $0x140] sm:$0xff] }
 0x11b   : > { %v2781_v0 = vpop.f32.mrf.mxu0  ;;  %v2869_v41 = vpop.f32.mrf.mxu1 }
 0x11c   : > { %v4230_v40 = vadd.f32 %v2868_v4, %v1341_v21 }
 0x11d   : > { %v2782_v44 = vpop.f32.mrf.mxu0  ;;  %v2870_v3 = vpop.f32.mrf.mxu1 }
 0x11e   : > { %v4234_v55 = vadd.f32 %v2782_v44, %v2781_v0  ;;  %v2871_v14 = vadd.f32 %v2870_v3, %v2869_v41 }
 0x11f   : > { %v2784_v15 = vpop.f32.mrf.mxu0  ;;  %v2872_v6 = vpop.f32.mrf.mxu1  ;;  %1894 = vmatmul.mubr.bf16.gmra.mxu1 %v4028_v16  ;;  %3231 = vmatmul.mubr.bf16.gmra.mxu0 %v4000_v59  ;;  %v621_v59 = vpack.c.bf16 %v2582_v29, %v2581_v19 }
 0x120   : > { %v4238_v57 = vadd.f32 %v2871_v14, %v1344_v11  ;;  %1901 = vmatprep.mubr.bf16.mxu1 %v4140_v8  ;;  %3234 = vmatprep.mubr.bf16.mxu0 %v4016_v9  ;;  %v1352_v9 = vadd.f32 %v4182_v52, %v4222_v49  ;;  %v1357_v52 = vadd.f32 %v4194_v20, %v4222_v49 }
 0x121   : > { %v2785_v56 = vpop.f32.mrf.mxu0  ;;  %v2873_v30 = vpop.f32.mrf.mxu1 }
 0x122   : > { %v4246_v37 = vadd.f32 %v2785_v56, %v2784_v15  ;;  %v2874_v32 = vadd.f32 %v2873_v30, %v2872_v6  ;;  %v2585_v56 = vld [vmem:[%s3674_s16 + $0x150] sm:$0xff]  ;;  %v2586_v30 = vld [vmem:[%s3674_s16 + $0x158] sm:$0xff] }
 0x123   : > { %v2787_v35 = vpop.f32.mrf.mxu0  ;;  %v2875_v16 = vpop.f32.mrf.mxu1 }
 0x124   : > { %v4248_v39 = vadd.f32 %v2874_v32, %v1349_v28 }
 0x125   : > { %v2788_v8 = vpop.f32.mrf.mxu0  ;;  %v2876_v33 = vpop.f32.mrf.mxu1 }
 0x126   : > { %v4252_v27 = vadd.f32 %v2788_v8, %v2787_v35  ;;  %v2877_v45 = vadd.f32 %v2876_v33, %v2875_v16 }
 0x127   : > { %v2790_v50 = vpop.f32.mrf.mxu0  ;;  %v2878_v25 = vpop.f32.mrf.mxu1  ;;  %1902 = vmatmul.mubr.bf16.gmra.mxu1 %v621_v59  ;;  %3235 = vmatmul.mubr.bf16.gmra.mxu0 %v4030_v17  ;;  %v622_v17 = vpack.c.bf16 %v2584_v62, %v2583_v5  ;;  %v2587_v62 = vld [vmem:[%s3674_s16 + $0x168] sm:$0xff] }
 0x128   : > { %v4255_v51 = vadd.f32 %v2877_v45, %v1352_v9  ;;  %1909 = vmatprep.mubr.bf16.mxu1 %v4148_v38  ;;  %3238 = vmatprep.mubr.bf16.mxu0 %v4038_v26  ;;  %v1360_v26 = vadd.f32 %v4200_v2, %v4222_v49  ;;  %v1365_v2 = vadd.f32 %v4211_v7, %v4222_v49 }
 0x129   : > { %v2791_v21 = vpop.f32.mrf.mxu0  ;;  %v2879_v4 = vpop.f32.mrf.mxu1 }
 0x12a   : > { %v4263_v0 = vadd.f32 %v2791_v21, %v2790_v50  ;;  %v2880_v41 = vadd.f32 %v2879_v4, %v2878_v25  ;;  %v2588_v21 = vld [vmem:[%s3674_s16 + $0x170] sm:$0xff] }
 0x12b   : > { %v2793_v44 = vpop.f32.mrf.mxu0  ;;  %v2881_v3 = vpop.f32.mrf.mxu1 }
 0x12c   : > { %v4265_v11 = vadd.f32 %v2880_v41, %v1357_v52 }
 0x12d   : > { %v2794_v38 = vpop.f32.mrf.mxu0  ;;  %v2882_v14 = vpop.f32.mrf.mxu1 }
 0x12e   : > { %v4269_v15 = vadd.f32 %v2794_v38, %v2793_v44  ;;  %v2883_v6 = vadd.f32 %v2882_v14, %v2881_v3  ;;  %v624_v38 = vpack.c.bf16 %v2588_v21, %v2587_v62  ;;  %v2592_v62 = vld [vmem:[%s3674_s16 + $0x1a0] sm:$0xff] }
 0x12f   : > { %v2796_v19 = vpop.f32.mrf.mxu0  ;;  %v2884_v20 = vpop.f32.mrf.mxu1  ;;  %1910 = vmatmul.mubr.bf16.gmra.mxu1 %v622_v17  ;;  %3239 = vmatmul.mubr.bf16.gmra.mxu0 %v4053_v31  ;;  %v623_v31 = vpack.c.bf16 %v2586_v30, %v2585_v56  ;;  %v2655_v21 = vld [vmem:[%s3674_s16 + $0x19a] sm:$0xff] }
 0x130   : > { %v4272_v29 = vadd.f32 %v2883_v6, %v1360_v26  ;;  %1917 = vmatprep.mubr.bf16.mxu1 %v4160_v18  ;;  %3242 = vmatprep.mubr.bf16.mxu0 %v4067_v34  ;;  %v1368_v34 = vadd.f32 %v4215_v58, %v4222_v49  ;;  %v1373_v58 = vadd.f32 %v4228_v54, %v4222_v49 }
 0x131   : > { %v2797_v28 = vpop.f32.mrf.mxu0  ;;  %v2885_v32 = vpop.f32.mrf.mxu1 }
 0x132   : > { %v4280_v35 = vadd.f32 %v2797_v28, %v2796_v19  ;;  %v2886_v16 = vadd.f32 %v2885_v32, %v2884_v20  ;;  %v2623_v28 = vld [vmem:[%s3674_s16 + $0x199] sm:$0xff]  ;;  %v2624_v32 = vld [vmem:[%s3674_s16 + $0x1a1] sm:$0xff] }
 0x133   : > { %v2799_v59 = vpop.f32.mrf.mxu0  ;;  %v2887_v8 = vpop.f32.mrf.mxu1 }
 0x134   : > { %v4282_v33 = vadd.f32 %v2886_v16, %v1365_v2 }
 0x135   : > { %v2800_v18 = vpop.f32.mrf.mxu0  ;;  %v2888_v9 = vpop.f32.mrf.mxu1 }
 0x136   : > { %v4286_v45 = vadd.f32 %v2800_v18, %v2799_v59  ;;  %v2889_v50 = vadd.f32 %v2888_v9, %v2887_v8  ;;  %v1384_v18 = vadd.f32 %v4252_v27, %v4222_v49 }
 0x137   : > { %v2802_v25 = vpop.f32.mrf.mxu0  ;;  %v2890_v7 = vpop.f32.mrf.mxu1  ;;  %1918 = vmatmul.mubr.bf16.gmra.mxu1 %v623_v31  ;;  %3243 = vmatmul.mubr.bf16.gmra.mxu0 %v4081_v43 }
 0x138   : > { %v4289_v5 = vadd.f32 %v2889_v50, %v1368_v34  ;;  %1925 = vmatprep.mubr.bf16.mxu1 %v4178_v42  ;;  %3246 = vmatprep.mubr.bf16.mxu0 %v4092_v46  ;;  %v1376_v46 = vadd.f32 %v4234_v55, %v4222_v49  ;;  %v1381_v55 = vadd.f32 %v4246_v37, %v4222_v49 }
 0x139   : > { %v2803_v4 = vpop.f32.mrf.mxu0  ;;  %v2891_v52 = vpop.f32.mrf.mxu1 }
 0x13a   : > { %v4297_v41 = vadd.f32 %v2803_v4, %v2802_v25  ;;  %v2892_v44 = vadd.f32 %v2891_v52, %v2890_v7  ;;  %v2591_v25 = vld [vmem:[%s3674_s16 + $0x198] sm:$0xff]  ;;  %v2656_v4 = vld [vmem:[%s3674_s16 + $0x1a2] sm:$0xff]  ;;  %s4570_s16 = sand.u32 1, %s3530_s19  }
 0x13b   : > { %v2805_v3 = vpop.f32.mrf.mxu0  ;;  %v2893_v17 = vpop.f32.mrf.mxu1  ;;  %s2463_s12 = sshll.u32 %s4570_s16, 8  ;;  %s2252_s7 = scalar_lea.sflag [#allocation3], %s4570_s16 }
 0x13c   : > { %v4299_v43 = vadd.f32 %v2892_v44, %v1373_v58  ;;  %v1389_v58 = vadd.f32 %v4263_v0, %v4222_v49  ;;  %s4599_s13 = scalar_lea.vmem [#allocation2], %s2463_s12 }
 0x13d   : > { %v2806_v42 = vpop.f32.mrf.mxu0  ;;  %v2894_v14 = vpop.f32.mrf.mxu1  ;;  %s2274_s15 = sshll.u32 %s4599_s13, 4  ;;  %s4723_s15 = int_to_ptr.vmem [resolvable:$true] %s2274_s15 }
 0x13e   : > { %v4303_v26 = vadd.f32 %v2806_v42, %v2805_v3  ;;  %v2895_v6 = vadd.f32 %v2894_v14, %v2893_v17  ;;  %s3414_s8 = scalar_lea.vmem %s4723_s15, 4096  ;;  %p3421_p1 = scmp.lt.s32.totalorder %s4723_s15, %s3419_s10 }
 0x13f   : > { %v2808_v19 = vpop.f32.mrf.mxu0  ;;  %v2896_v54 = vpop.f32.mrf.mxu1  ;;  %1926 = vmatmul.mubr.bf16.gmra.mxu1 %v624_v38  ;;  %3247 = vmatmul.mubr.bf16.gmra.mxu0 %v4100_v48  ;;  %v722_v38 = vpack.c.bf16 %v2656_v4, %v2655_v21  ;;  %v1405_v21 = vadd.f32 %v4297_v41, %v4222_v49  ;;  %p3415_p12 = scmp.ne.s32.totalorder %s4723_s15, %s3414_s8  ;;  %p3422_p2 = scmp.lt.s32.totalorder %s3420_s11, %s3414_s8 }
 0x140   : > { %v4306_v20 = vadd.f32 %v2895_v6, %v1376_v46  ;;  %1933 = vmatprep.mubr.bf16.mxu1 %v4198_v1  ;;  %3250 = vmatprep.mubr.bf16.mxu0 %v4110_v53  ;;  %v674_v1 = vpack.c.bf16 %v2624_v32, %v2623_v28  ;;  %v1397_v32 = vadd.f32 %v4280_v35, %v4222_v49 }
 0x141   : > { %v2809_v56 = vpop.f32.mrf.mxu0  ;;  %v2897_v30 = vpop.f32.mrf.mxu1  ;;  %p3416_p13 = pnand %p3415_p12, %p3625_p4  ;;  %p3423_p3 = por %p3422_p2, %p3421_p1 }
 0x142   : > { %v4314_v2 = vadd.f32 %v2809_v56, %v2808_v19  ;;  %v2898_v16 = vadd.f32 %v2897_v30, %v2896_v54 }
 0x143   : > { %v2811_v59 = vpop.f32.mrf.mxu0  ;;  %v2899_v8 = vpop.f32.mrf.mxu1  ;;  %p3417_p0 = pneg %p3416_p13 }
 0x144   : > { %v4316_v48 = vadd.f32 %v2898_v16, %v1381_v55 }
 0x145   : > { %v2812_v53 = vpop.f32.mrf.mxu0  ;;  %v2900_v31 = vpop.f32.mrf.mxu1  ;;  %p3424_p5 = pnand %p3423_p3, %p3417_p0 }
 0x146   : > { %v4320_v9 = vadd.f32 %v2812_v53, %v2811_v59  ;;  %v2901_v37 = vadd.f32 %v2900_v31, %v2899_v8  ;;  %v1400_v31 = vadd.f32 %v4286_v45, %v4222_v49 }
 0x147   : > { %v2814_v34 = vpop.f32.mrf.mxu0  ;;  %v2902_v50 = vpop.f32.mrf.mxu1  ;;  %1934 = vmatmul.mubr.bf16.gmra.mxu1 %v4112_v61  ;;  %3251 = vmatmul.mubr.bf16.gmra.mxu0 %v4120_v63  ;;  %v626_v63 = vpack.c.bf16 %v2592_v62, %v2591_v25 }
 0x148   : > { %v4325_v7 = vadd.f32 %v2901_v37, %v1384_v18  ;;  %1941 = vmatprep.mubr.bf16.mxu1 %v674_v1  ;;  %3254 = vmatprep.mubr.bf16.mxu0 %v4180_v23  ;;  %v1392_v23 = vadd.f32 %v4269_v15, %v4222_v49 }
 0x149   : > { %v2815_v52 = vpop.f32.mrf.mxu0  ;;  %v2903_v27 = vpop.f32.mrf.mxu1 }
 0x14a   : > { %v4333_v44 = vadd.f32 %v2815_v52, %v2814_v34  ;;  %v2904_v3 = vadd.f32 %v2903_v27, %v2902_v50 }
 0x14b   : > { %v2817_v61 = vpop.f32.mrf.mxu0  ;;  %v2905_v17 = vpop.f32.mrf.mxu1 }
 0x14c   : > { %v4335_v42 = vadd.f32 %v2904_v3, %v1389_v58 }
 0x14d   : > { %v2818_v14 = vpop.f32.mrf.mxu0  ;;  %v2906_v46 = vpop.f32.mrf.mxu1 }
 0x14e   : > { %v4339_v6 = vadd.f32 %v2818_v14, %v2817_v61  ;;  %v2907_v19 = vadd.f32 %v2906_v46, %v2905_v17 }
 0x14f   : > { %v2820_v54 = vpop.f32.mrf.mxu0  ;;  %v2908_v56 = vpop.f32.mrf.mxu1  ;;  %1942 = vmatmul.mubr.bf16.gmra.mxu1 %v626_v63  ;;  %3255 = vmatmul.mubr.bf16.gmra.mxu0 %v722_v38  ;;  %v1408_v63 = vadd.f32 %v4303_v26, %v4222_v49 }
 0x150   : > { %v4341_v0 = vadd.f32 %v2907_v19, %v1392_v23 }
 0x151   : > { %v2821_v30 = vpop.f32.mrf.mxu0  ;;  %v2909_v28 = vpop.f32.mrf.mxu1 }
 0x152   : > { %v4345_v55 = vadd.f32 %v2821_v30, %v2820_v54  ;;  %v2910_v16 = vadd.f32 %v2909_v28, %v2908_v56 }
 0x153   : > { %v2823_v59 = vpop.f32.mrf.mxu0  ;;  %v2911_v8 = vpop.f32.mrf.mxu1 }
 0x154   : > { %v4347_v15 = vadd.f32 %v2910_v16, %v1397_v32 }
 0x155   : > { %v2824_v1 = vpop.f32.mrf.mxu0  ;;  %v2912_v53 = vpop.f32.mrf.mxu1 }
 0x156   : > { %v4351_v18 = vadd.f32 %v2824_v1, %v2823_v59  ;;  %v2913_v37 = vadd.f32 %v2912_v53, %v2911_v8 }
 0x157   : > { %v2914_v34 = vpop.f32.mrf.mxu1  ;;  %v2978_v50 = vpop.f32.mrf.mxu0 }
 0x158   : > { %v4353_v25 = vadd.f32 %v2913_v37, %v1400_v31 }
 0x159   : > { %v2915_v35 = vpop.f32.mrf.mxu1  ;;  %v2979_v62 = vpop.f32.mrf.mxu0 }
 0x15a   : > { %v2916_v4 = vadd.f32 %v2915_v35, %v2914_v34  ;;  %v2980_v52 = vadd.f32 %v2979_v62, %v2978_v50 }
 0x15b   : > { %v2917_v27 = vpop.f32.mrf.mxu1  ;;  %v2981_v58 = vpop.f32.mrf.mxu0 }
 0x15c   : > { %v4357_v3 = vadd.f32 %v2916_v4, %v1405_v21  ;;  %v4360_v45 = vadd.f32 %v2980_v52, %v4230_v40  ;;  %v1413_v40 = vadd.f32 %v4314_v2, %v4222_v49 }
 0x15d   : > { %v2918_v61 = vpop.f32.mrf.mxu1  ;;  %v2982_v17 = vpop.f32.mrf.mxu0 }
 0x15e   : > { %v2919_v38 = vadd.f32 %v2918_v61, %v2917_v27  ;;  %v2983_v14 = vadd.f32 %v2982_v17, %v2981_v58 }
 0x15f   : > { %v2920_v46 = vpop.f32.mrf.mxu1  ;;  %v2984_v23 = vpop.f32.mrf.mxu0 }
 0x160   : > { %v4364_v19 = vadd.f32 %v2919_v38, %v1408_v63  ;;  %v4367_v41 = vadd.f32 %v2983_v14, %v4238_v57  ;;  %v1416_v57 = vadd.f32 %v4320_v9, %v4222_v49 }
 0x161   : > { %v2921_v54 = vpop.f32.mrf.mxu1  ;;  %v2985_v56 = vpop.f32.mrf.mxu0 }
 0x162   : > { %v2922_v30 = vadd.f32 %v2921_v54, %v2920_v46  ;;  %v2986_v28 = vadd.f32 %v2985_v56, %v2984_v23 }
 0x163   : > { %v2923_v32 = vpop.f32.mrf.mxu1  ;;  %v2987_v16 = vpop.f32.mrf.mxu0 }
 0x164   : > { %v4371_v59 = vadd.f32 %v2922_v30, %v1413_v40  ;;  %v4374_v26 = vadd.f32 %v2986_v28, %v4248_v39  ;;  %v1421_v39 = vadd.f32 %v4333_v44, %v4222_v49 }
 0x165   : > { %v2924_v8 = vpop.f32.mrf.mxu1  ;;  %v2988_v1 = vpop.f32.mrf.mxu0 }
 0x166   : > { %v2925_v53 = vadd.f32 %v2924_v8, %v2923_v32  ;;  %v2989_v31 = vadd.f32 %v2988_v1, %v2987_v16 }
 0x167   : > { %v2926_v37 = vpop.f32.mrf.mxu1  ;;  %v2990_v34 = vpop.f32.mrf.mxu0 }
 0x168   : > { %v4378_v50 = vadd.f32 %v2925_v53, %v1416_v57  ;;  %v4381_v2 = vadd.f32 %v2989_v31, %v4255_v51  ;;  %v1424_v51 = vadd.f32 %v4339_v6, %v4222_v49 }
 0x169   : > { %v2927_v35 = vpop.f32.mrf.mxu1  ;;  %v2991_v62 = vpop.f32.mrf.mxu0 }
 0x16a   : > { %v2928_v21 = vadd.f32 %v2927_v35, %v2926_v37  ;;  %v2992_v4 = vadd.f32 %v2991_v62, %v2990_v34 }
 0x16b   : > { %v2929_v52 = vpop.f32.mrf.mxu1  ;;  %v2993_v27 = vpop.f32.mrf.mxu0 }
 0x16c   : > { %v4385_v58 = vadd.f32 %v2928_v21, %v1421_v39  ;;  %v4388_v9 = vadd.f32 %v2992_v4, %v4265_v11  ;;  %v1429_v11 = vadd.f32 %v4345_v55, %v4222_v49 }
 0x16d   : > { %v2930_v61 = vpop.f32.mrf.mxu1  ;;  %v2994_v17 = vpop.f32.mrf.mxu0 }
 0x16e   : > { %v2931_v63 = vadd.f32 %v2930_v61, %v2929_v52  ;;  %v2995_v38 = vadd.f32 %v2994_v17, %v2993_v27 }
 0x16f   : > { %v2932_v14 = vpop.f32.mrf.mxu1  ;;  %v2996_v46 = vpop.f32.mrf.mxu0 }
 0x170   : > { %v4392_v23 = vadd.f32 %v2931_v63, %v1424_v51  ;;  %v4395_v44 = vadd.f32 %v2995_v38, %v4272_v29  ;;  %v1432_v29 = vadd.f32 %v4351_v18, %v4222_v49 }
 0x171   : > { %v2933_v54 = vpop.f32.mrf.mxu1  ;;  %v2997_v56 = vpop.f32.mrf.mxu0 }
 0x172   : > { %v2934_v40 = vadd.f32 %v2933_v54, %v2932_v14  ;;  %v2998_v30 = vadd.f32 %v2997_v56, %v2996_v46 }
 0x173   : > { %v2935_v28 = vpop.f32.mrf.mxu1  ;;  %v2999_v32 = vpop.f32.mrf.mxu0 }
 0x174   : > { %v4399_v16 = vadd.f32 %v2934_v40, %v1429_v11  ;;  %v4402_v6 = vadd.f32 %v2998_v30, %v4282_v33  ;;  %v1437_v33 = vadd.f32 %v4158_v13, %v4222_v49 }
 0x175   : > { %v2936_v8 = vpop.f32.mrf.mxu1  ;;  %v3000_v1 = vpop.f32.mrf.mxu0 }
 0x176   : > { %v2937_v57 = vadd.f32 %v2936_v8, %v2935_v28  ;;  %v3001_v53 = vadd.f32 %v3000_v1, %v2999_v32 }
 0x177   : > { %v2938_v31 = vpop.f32.mrf.mxu1  ;;  %v3002_v37 = vpop.f32.mrf.mxu0 }
 0x178   : > { %v4406_v34 = vadd.f32 %v2937_v57, %v1432_v29  ;;  %v4409_v55 = vadd.f32 %v3001_v53, %v4289_v5  ;;  %v1440_v5 = vadd.f32 %v4164_v10, %v4222_v49 }
 0x179   : > { %v2939_v35 = vpop.f32.mrf.mxu1  ;;  %v3003_v62 = vpop.f32.mrf.mxu0 }
 0x17a   : > { %v2940_v39 = vadd.f32 %v2939_v35, %v2938_v31  ;;  %v3004_v21 = vadd.f32 %v3003_v62, %v3002_v37 }
 0x17b   : > { %v2941_v4 = vpop.f32.mrf.mxu1  ;;  %v3005_v52 = vpop.f32.mrf.mxu0 }
 0x17c   : > { %v4413_v27 = vadd.f32 %v2940_v39, %v1437_v33  ;;  %v4416_v18 = vadd.f32 %v3004_v21, %v4299_v43  ;;  %v1445_v43 = vadd.f32 %v4176_v36, %v4222_v49 }
 0x17d   : > { %v2942_v61 = vpop.f32.mrf.mxu1  ;;  %v3006_v17 = vpop.f32.mrf.mxu0 }
 0x17e   : > { %v2943_v51 = vadd.f32 %v2942_v61, %v2941_v4  ;;  %v3007_v63 = vadd.f32 %v3006_v17, %v3005_v52 }
 0x17f   : > { %v2944_v38 = vpop.f32.mrf.mxu1  ;;  %v3008_v14 = vpop.f32.mrf.mxu0 }
 0x180   : > { %v4420_v46 = vadd.f32 %v2943_v51, %v1440_v5  ;;  %v4423_v13 = vadd.f32 %v3007_v63, %v4306_v20  ;;  %v1448_v20 = vadd.f32 %v4184_v47, %v4222_v49 }
 0x181   : > { %v2945_v54 = vpop.f32.mrf.mxu1  ;;  %v3009_v56 = vpop.f32.mrf.mxu0 }
 0x182   : > { %v2946_v11 = vadd.f32 %v2945_v54, %v2944_v38  ;;  %v3010_v40 = vadd.f32 %v3009_v56, %v3008_v14 }
 0x183   : > { %v2947_v30 = vpop.f32.mrf.mxu1  ;;  %v3011_v28 = vpop.f32.mrf.mxu0 }
 0x184   : > { %v4427_v32 = vadd.f32 %v2946_v11, %v1445_v43  ;;  %v4430_v10 = vadd.f32 %v3010_v40, %v4316_v48  ;;  %v1453_v48 = vadd.f32 %v4196_v24, %v4222_v49 }
 0x185   : > { %v2948_v8 = vpop.f32.mrf.mxu1  ;;  %v3012_v1 = vpop.f32.mrf.mxu0 }
 0x186   : > { %v2949_v29 = vadd.f32 %v2948_v8, %v2947_v30  ;;  %v3013_v57 = vadd.f32 %v3012_v1, %v3011_v28 }
 0x187   : > { %v2950_v53 = vpop.f32.mrf.mxu1  ;;  %v3014_v31 = vpop.f32.mrf.mxu0 }
 0x188   : > { %v4434_v37 = vadd.f32 %v2949_v29, %v1448_v20  ;;  %v4437_v36 = vadd.f32 %v3013_v57, %v4325_v7  ;;  %v1456_v7 = vadd.f32 %v4202_v12, %v4222_v49 }
 0x189   : > { %v2951_v35 = vpop.f32.mrf.mxu1  ;;  %v3015_v62 = vpop.f32.mrf.mxu0 }
 0x18a   : > { %v2952_v33 = vadd.f32 %v2951_v35, %v2950_v53  ;;  %v3016_v39 = vadd.f32 %v3015_v62, %v3014_v31 }
 0x18b   : > { %v2953_v21 = vpop.f32.mrf.mxu1  ;;  %v3017_v4 = vpop.f32.mrf.mxu0 }
 0x18c   : > { %v4441_v52 = vadd.f32 %v2952_v33, %v1453_v48  ;;  %v4444_v47 = vadd.f32 %v3016_v39, %v4335_v42  ;;  %v1461_v42 = vadd.f32 %v4213_v22, %v4222_v49 }
 0x18d   : > { %v2954_v61 = vpop.f32.mrf.mxu1  ;;  %v3018_v17 = vpop.f32.mrf.mxu0 }
 0x18e   : > { %v2955_v5 = vadd.f32 %v2954_v61, %v2953_v21  ;;  %v3019_v51 = vadd.f32 %v3018_v17, %v3017_v4 }
 0x18f   : > { %v2956_v63 = vpop.f32.mrf.mxu1  ;;  %v3020_v38 = vpop.f32.mrf.mxu0 }
 0x190   : > { %v4448_v14 = vadd.f32 %v2955_v5, %v1456_v7  ;;  %v4451_v24 = vadd.f32 %v3019_v51, %v4341_v0  ;;  %v1464_v0 = vadd.f32 %v4217_v60, %v4222_v49 }
 0x191   : > { %v2957_v54 = vpop.f32.mrf.mxu1  ;;  %v3021_v56 = vpop.f32.mrf.mxu0 }
 0x192   : > { %v2958_v43 = vadd.f32 %v2957_v54, %v2956_v63  ;;  %v3022_v11 = vadd.f32 %v3021_v56, %v3020_v38 }
 0x193   : > { %v2959_v40 = vpop.f32.mrf.mxu1  ;;  %v3023_v30 = vpop.f32.mrf.mxu0 }
 0x194   : > { %v4455_v28 = vadd.f32 %v2958_v43, %v1461_v42  ;;  %v4458_v12 = vadd.f32 %v3022_v11, %v4347_v15 }
 0x195   : > { %v2960_v8 = vpop.f32.mrf.mxu1  ;;  %v3024_v1 = vpop.f32.mrf.mxu0 }
 0x196   : > { %v2961_v20 = vadd.f32 %v2960_v8, %v2959_v40  ;;  %v3025_v29 = vadd.f32 %v3024_v1, %v3023_v30 }
 0x197   : > { %v3026_v57 = vpop.f32.mrf.mxu0  ;;  %v4462_v53 = vpop.f32.mrf.mxu1 }
 0x198   : > { %v4464_v22 = vadd.f32 %v2961_v20, %v1464_v0  ;;  %v4467_v31 = vadd.f32 %v3025_v29, %v4353_v25 }
 0x199   : > { %v3027_v35 = vpop.f32.mrf.mxu0  ;;  %v4469_v62 = vpop.f32.mrf.mxu1 }
 0x19a   : > { %v3028_v15 = vadd.f32 %v3027_v35, %v3026_v57 }
 0x19b   : > { %v3029_v48 = vpop.f32.mrf.mxu0  ;;  %v4471_v33 = vpop.f32.mrf.mxu1 }
 0x19c   : > { %v4474_v39 = vadd.f32 %v3028_v15, %v4357_v3 }
 0x19d   : > { %v3030_v60 = vpop.f32.mrf.mxu0  ;;  %v4476_v49 = vpop.f32.mrf.mxu1 }
 0x19e   : > { %v3031_v21 = vadd.f32 %v3030_v60, %v3029_v48 }
 0x19f   : > { %v3032_v4 = vpop.f32.mrf.mxu0  ;;  %v4478_v61 = vpop.f32.mrf.mxu1 }
 0x1a0   : > { %v4481_v25 = vadd.f32 %v3031_v21, %v4364_v19 }
 0x1a1   : > { %v3033_v17 = vpop.f32.mrf.mxu0  ;;  %v4483_v7 = vpop.f32.mrf.mxu1 }
 0x1a2   : > { %v3034_v5 = vadd.f32 %v3033_v17, %v3032_v4 }
 0x1a3   : > { %v3035_v51 = vpop.f32.mrf.mxu0  ;;  %v4485_v63 = vpop.f32.mrf.mxu1 }
 0x1a4   : > { %v4488_v3 = vadd.f32 %v3034_v5, %v4371_v59 }
 0x1a5   : > { %v3036_v38 = vpop.f32.mrf.mxu0  ;;  %v4490_v54 = vpop.f32.mrf.mxu1 }
 0x1a6   : > { %v3037_v56 = vadd.f32 %v3036_v38, %v3035_v51 }
 0x1a7   : > { %v3038_v42 = vpop.f32.mrf.mxu0  ;;  %v4492_v43 = vpop.f32.mrf.mxu1 }
 0x1a8   : > { %v4495_v19 = vadd.f32 %v3037_v56, %v4378_v50 }
 0x1a9   : > { %v3039_v11 = vpop.f32.mrf.mxu0  ;;  %v4497_v40 = vpop.f32.mrf.mxu1 }
 0x1aa   : > { %v3040_v30 = vadd.f32 %v3039_v11, %v3038_v42 }
 0x1ab   : > { %v3041_v8 = vpop.f32.mrf.mxu0  ;;  %v4499_v1 = vpop.f32.mrf.mxu1 }
 0x1ac   : > { %v4502_v59 = vadd.f32 %v3040_v30, %v4385_v58 }
 0x1ad   : > { %v3042_v0 = vpop.f32.mrf.mxu0  ;;  %v4504_v20 = vpop.f32.mrf.mxu1 }
 0x1ae   : > { %4853 = vst [vmem:[#allocation9_spill] sm:$0xff] %v4502_v59  ;;  %v3043_v29 = vadd.f32 %v3042_v0, %v3041_v8 }
 0x1af   : > { %v3044_v57 = vpop.f32.mrf.mxu0  ;;  %v4506_v35 = vpop.f32.mrf.mxu1 }
 0x1b0   : > { %v4509_v50 = vadd.f32 %v3043_v29, %v4392_v23 }
 0x1b1   : > { %v3045_v15 = vpop.f32.mrf.mxu0  ;;  %v4511_v48 = vpop.f32.mrf.mxu1 }
 0x1b2   : > { %4854 = vst [vmem:[#allocation10_spill] sm:$0xff] %v4509_v50  ;;  %v3046_v60 = vadd.f32 %v3045_v15, %v3044_v57 }
 0x1b3   : > { %v3047_v21 = vpop.f32.mrf.mxu0  ;;  %v4513_v4 = vpop.f32.mrf.mxu1 }
 0x1b4   : > { %v4516_v58 = vadd.f32 %v3046_v60, %v4399_v16 }
 0x1b5   : > { %v3048_v17 = vpop.f32.mrf.mxu0  ;;  %v4518_v5 = vpop.f32.mrf.mxu1 }
 0x1b6   : > { %4855 = vst [vmem:[#allocation11_spill] sm:$0xff] %v4516_v58  ;;  %v3049_v51 = vadd.f32 %v3048_v17, %v3047_v21 }
 0x1b7   : > { %v3050_v38 = vpop.f32.mrf.mxu0  ;;  %v4520_v56 = vpop.f32.mrf.mxu1 }
 0x1b8   : > { %v4523_v23 = vadd.f32 %v3049_v51, %v4406_v34 }
 0x1b9   : > { %v3051_v42 = vpop.f32.mrf.mxu0  ;;  %v4525_v11 = vpop.f32.mrf.mxu1 }
 0x1ba   : > { %4856 = vst [vmem:[#allocation12_spill] sm:$0xff] %v4523_v23  ;;  %v3052_v30 = vadd.f32 %v3051_v42, %v3050_v38 }
 0x1bb   : > { %v3053_v8 = vpop.f32.mrf.mxu0  ;;  %v4527_v0 = vpop.f32.mrf.mxu1 }
 0x1bc   : > { %v4530_v16 = vadd.f32 %v3052_v30, %v4413_v27 }
 0x1bd   : > { %v3054_v29 = vpop.f32.mrf.mxu0  ;;  %v4532_v57 = vpop.f32.mrf.mxu1 }
 0x1be   : > { %4857 = vst [vmem:[#allocation13_spill] sm:$0xff] %v4530_v16  ;;  %v3055_v15 = vadd.f32 %v3054_v29, %v3053_v8 }
 0x1bf   : > { %v3056_v60 = vpop.f32.mrf.mxu0  ;;  %v4534_v21 = vpop.f32.mrf.mxu1 }
 0x1c0   : > { %v4537_v34 = vadd.f32 %v3055_v15, %v4420_v46 }
 0x1c1   : > { %v3057_v17 = vpop.f32.mrf.mxu0  ;;  %v4539_v51 = vpop.f32.mrf.mxu1 }
 0x1c2   : > { %4858 = vst [vmem:[#allocation14_spill] sm:$0xff] %v4537_v34  ;;  %v3058_v38 = vadd.f32 %v3057_v17, %v3056_v60 }
 0x1c3   : > { %v3059_v42 = vpop.f32.mrf.mxu0  ;;  %v4541_v50 = vpop.f32.mrf.mxu1 }
 0x1c4   : > { %v4544_v27 = vadd.f32 %v3058_v38, %v4427_v32 }
 0x1c5   : > { %v3060_v30 = vpop.f32.mrf.mxu0  ;;  %v4546_v16 = vpop.f32.mrf.mxu1 }
 0x1c6   : > { %4859 = vst [vmem:[#allocation15_spill] sm:$0xff] %v4544_v27  ;;  %v3061_v8 = vadd.f32 %v3060_v30, %v3059_v42 }
 0x1c7   : > { %v3062_v29 = vpop.f32.mrf.mxu0  ;;  %v4548_v23 = vpop.f32.mrf.mxu1 }
 0x1c8   : > { %v4551_v46 = vadd.f32 %v3061_v8, %v4434_v37 }
 0x1c9   : > { %v3063_v15 = vpop.f32.mrf.mxu0  ;;  %v4553_v34 = vpop.f32.mrf.mxu1 }
 0x1ca   : > { %4860 = vst [vmem:[#allocation16_spill] sm:$0xff] %v4551_v46  ;;  %v3064_v60 = vadd.f32 %v3063_v15, %v3062_v29 }
 0x1cb   : > { %v3065_v17 = vpop.f32.mrf.mxu0  ;;  %v4555_v59 = vpop.f32.mrf.mxu1 }
 0x1cc   : > { %v4558_v32 = vadd.f32 %v3064_v60, %v4441_v52  ;;  %v3098_v52 = vadd.f32 %v4483_v7, %v4478_v61 }
 0x1cd   : > { %v3066_v38 = vpop.f32.mrf.mxu0  ;;  %v4560_v27 = vpop.f32.mrf.mxu1 }
 0x1ce   : > { %4861 = vst [vmem:[#allocation17_spill] sm:$0xff] %v4558_v32  ;;  %v3067_v42 = vadd.f32 %v3066_v38, %v3065_v17  ;;  %v3092_v17 = vadd.f32 %v4469_v62, %v4462_v53  ;;  %v1832_v61 = vadd.f32 %v3098_v52, %v4374_v26  ;;  %v3113_v52 = vadd.f32 %v4518_v5, %v4513_v4 }
 0x1cf   : > { %v3068_v30 = vpop.f32.mrf.mxu0  ;;  %v4562_v58 = vpop.f32.mrf.mxu1 }
 0x1d0   : > { %v4565_v37 = vadd.f32 %v3067_v42, %v4448_v14  ;;  %v1824_v62 = vadd.f32 %v3092_v17, %v4360_v45 }
 0x1d1   : > { %v3069_v8 = vpop.f32.mrf.mxu0  ;;  %v4567_v46 = vpop.f32.mrf.mxu1 }
 0x1d2   : > { %4862 = vst [vmem:[#allocation18_spill] sm:$0xff] %v4565_v37  ;;  %v3070_v29 = vadd.f32 %v3069_v8, %v3068_v30  ;;  %v3101_v37 = vadd.f32 %v4490_v54, %v4485_v63  ;;  %v3095_v8 = vadd.f32 %v4476_v49, %v4471_v33  ;;  %v3110_v63 = vadd.f32 %v4511_v48, %v4506_v35 }
 0x1d3   : > { %v3071_v15 = vpop.f32.mrf.mxu0  ;;  %v4574_v60 = vpop.f32.mrf.mxu1  ;;  %v3104_v35 = vadd.f32 %v4497_v40, %v4492_v43  ;;  %v3107_v43 = vadd.f32 %v4504_v20, %v4499_v1  ;;  %v3122_v40 = vadd.f32 %v4539_v51, %v4534_v21 }
 0x1d4   : > { %v4579_v38 = vadd.f32 %v3070_v29, %v4455_v28  ;;  %v1835_v33 = vadd.f32 %v3101_v37, %v4381_v2  ;;  %v1827_v54 = vadd.f32 %v3095_v8, %v4367_v41  ;;  %v1848_v2 = vadd.f32 %v3110_v63, %v4402_v6 }
 0x1d5   : > { %v3072_v14 = vpop.f32.mrf.mxu0  ;;  %v4582_v42 = vpop.f32.mrf.mxu1  ;;  %v1840_v6 = vadd.f32 %v3104_v35, %v4388_v9  ;;  %v1851_v63 = vadd.f32 %v3113_v52, %v4409_v55  ;;  %v1864_v55 = vadd.f32 %v3122_v40, %v4430_v10 }
 0x1d6   : > { %4863 = vst [vmem:[#allocation19_spill] sm:$0xff] %v4579_v38  ;;  %v3073_v32 = vadd.f32 %v3072_v14, %v3071_v15 }
 0x1d7   : > { %v4587_v7 = vpop.f32.mrf.mxu1  ;;  %v3228_v30 = vpop.f32.mrf.mxu0 }
 0x1d8   : > { %v4592_v53 = vadd.f32 %v3073_v32, %v4464_v22  ;;  %v1993_v28 = vadd.f32 %v3228_v30, %v1832_v61 }
 0x1d9   : > { %v4595_v29 = vpop.f32.mrf.mxu1  ;;  %v1984_v38 = vpop.f32.mrf.mxu0 }
 0x1da   : > { %2221 = vst [vmem:[%s4599_s13 + $0x10] sm:$0xff] %v1993_v28  ;;  %v1985_v26 = vadd.f32 %v1984_v38, %v1824_v62  ;;  %v2151_v30 = vmul.f32 %v1993_v28, %v1993_v28 }
 0x1db   : > { %v4603_v22 = vpop.f32.mrf.mxu1  ;;  %v3229_v49 = vpop.f32.mrf.mxu0 }
 0x1dc   : > { %2219 = vst [vmem:[%s4599_s13] sm:$0xff] %v1985_v26  ;;  %v1996_v45 = vadd.f32 %v3229_v49, %v1835_v33  ;;  %v2149_v38 = vmul.f32 %v1985_v26, %v1985_v26 }
 0x1dd   : > { %v4609_v48 = vpop.f32.mrf.mxu1  ;;  %v1987_v32 = vpop.f32.mrf.mxu0 }
 0x1de   : > { %2222 = vst [vmem:[%s4599_s13 + $0x18] sm:$0xff] %v1996_v45  ;;  %v1988_v15 = vadd.f32 %v1987_v32, %v1827_v54  ;;  %v2152_v21 = vmul.f32 %v1996_v45, %v1996_v45 }
 0x1df   : > { %v4615_v37 = vpop.f32.mrf.mxu1  ;;  %v3232_v17 = vpop.f32.mrf.mxu0 }
 0x1e0   : > { %v2111_v14 = vadd.f32 %v1988_v15, %v1985_v26  ;;  %v2150_v41 = vmul.f32 %v1988_v15, %v1988_v15  ;;  %2220 = vst [vmem:[%s4599_s13 + $0x8] sm:$0xff] %v1988_v15  ;;  %v2009_v61 = vadd.f32 %v3232_v17, %v1848_v2  ;;  %v3116_v26 = vadd.f32 %v4525_v11, %v4520_v56 }
 0x1e1   : > { %v4622_v4 = vpop.f32.mrf.mxu1  ;;  %v2000_v5 = vpop.f32.mrf.mxu0  ;;  %v3125_v56 = vadd.f32 %v4546_v16, %v4541_v50  ;;  %v3119_v17 = vadd.f32 %v4532_v57, %v4527_v0 }
 0x1e2   : > { %v2112_v8 = vadd.f32 %v2111_v14, %v1993_v28  ;;  %v2181_v62 = vadd.f32 %v2150_v41, %v2149_v38  ;;  %2225 = vst [vmem:[%s4599_s13 + $0x30] sm:$0xff] %v2009_v61  ;;  %v2001_v33 = vadd.f32 %v2000_v5, %v1840_v6  ;;  %v1843_v28 = vadd.f32 %v3107_v43, %v4395_v44 }
 0x1e3   : > { %v4629_v1 = vpop.f32.mrf.mxu1  ;;  %v3233_v20 = vpop.f32.mrf.mxu0  ;;  %v1856_v14 = vadd.f32 %v3116_v26, %v4416_v18  ;;  %v3134_v43 = vadd.f32 %v4567_v46, %v4562_v58  ;;  %v1867_v6 = vadd.f32 %v3125_v56, %v4437_v36  ;;  %v2155_v0 = vmul.f32 %v2009_v61, %v2009_v61 }
 0x1e4   : > { %v2182_v51 = vadd.f32 %v2181_v62, %v2151_v30  ;;  %v2113_v49 = vadd.f32 %v2112_v8, %v1996_v45  ;;  %v2012_v54 = vadd.f32 %v3233_v20, %v1851_v63  ;;  %2223 = vst [vmem:[%s4599_s13 + $0x20] sm:$0xff] %v2001_v33  ;;  %v2153_v32 = vmul.f32 %v2001_v33, %v2001_v33 }
 0x1e5   : > { %v4632_v9 = vpop.f32.mrf.mxu1  ;;  %v2003_v35 = vpop.f32.mrf.mxu0  ;;  %v3128_v8 = vadd.f32 %v4553_v34, %v4548_v23  ;;  %v1859_v63 = vadd.f32 %v3119_v17, %v4423_v13 }
 0x1e6   : > { %v2114_v11 = vadd.f32 %v2113_v49, %v2001_v33  ;;  %v2183_v52 = vadd.f32 %v2182_v51, %v2152_v21  ;;  %2226 = vst [vmem:[%s4599_s13 + $0x38] sm:$0xff] %v2012_v54  ;;  %v2004_v15 = vadd.f32 %v2003_v35, %v1843_v28  ;;  %v2156_v26 = vmul.f32 %v2012_v54, %v2012_v54 }
 0x1e7   : > { %v4639_v45 = vpop.f32.mrf.mxu1  ;;  %v3236_v2 = vpop.f32.mrf.mxu0  ;;  %v1880_v21 = vadd.f32 %v3134_v43, %v4458_v12  ;;  %v3131_v28 = vadd.f32 %v4560_v27, %v4555_v59  ;;  %v3146_v12 = vadd.f32 %v4622_v4, %v4615_v37 }
 0x1e8   : > { %v2184_v44 = vadd.f32 %v2183_v52, %v2153_v32  ;;  %v2025_v38 = vadd.f32 %v3236_v2, %v1864_v55  ;;  %v2115_v10 = vadd.f32 %v2114_v11, %v2004_v15  ;;  %v2154_v41 = vmul.f32 %v2004_v15, %v2004_v15  ;;  %2224 = vst [vmem:[%s4599_s13 + $0x28] sm:$0xff] %v2004_v15 }
 0x1e9   : > { %v4645_v50 = vpop.f32.mrf.mxu1  ;;  %v2016_v16 = vpop.f32.mrf.mxu0  ;;  %v1872_v55 = vadd.f32 %v3128_v8, %v4444_v47  ;;  %v3140_v47 = vadd.f32 %v4595_v29, %v4587_v7  ;;  %v1896_v43 = vadd.f32 %v3146_v12, %v4488_v3 }
 0x1ea   : > { %2229 = vst [vmem:[%s4599_s13 + $0x50] sm:$0xff] %v2025_v38  ;;  %v2017_v40 = vadd.f32 %v2016_v16, %v1856_v14  ;;  %v2116_v57 = vadd.f32 %v2115_v10, %v2009_v61  ;;  %v2185_v5 = vadd.f32 %v2184_v44, %v2154_v41  ;;  %v3137_v61 = vadd.f32 %v4582_v42, %v4574_v60 }
 0x1eb   : > { %v4651_v30 = vpop.f32.mrf.mxu1  ;;  %v3237_v18 = vpop.f32.mrf.mxu0  ;;  %v2159_v15 = vmul.f32 %v2025_v38, %v2025_v38  ;;  %v1875_v14 = vadd.f32 %v3131_v28, %v4451_v24  ;;  %v3143_v24 = vadd.f32 %v4609_v48, %v4603_v22  ;;  %v4864_v28 = vld [vmem:[#allocation11_spill] sm:$0xff] }
 0x1ec   : > { %2227 = vst [vmem:[%s4599_s13 + $0x40] sm:$0xff] %v2017_v40  ;;  %v2028_v62 = vadd.f32 %v3237_v18, %v1867_v6  ;;  %v2186_v58 = vadd.f32 %v2185_v5, %v2155_v0  ;;  %v2117_v46 = vadd.f32 %v2116_v57, %v2012_v54  ;;  %v2157_v34 = vmul.f32 %v2017_v40, %v2017_v40 }
 0x1ed   : > { %v4657_v33 = vpop.f32.mrf.mxu1  ;;  %v2019_v36 = vpop.f32.mrf.mxu0  ;;  %v1883_v52 = vadd.f32 %v3137_v61, %v4467_v31  ;;  %v3149_v31 = vadd.f32 %v4632_v9, %v4629_v1  ;;  %v1888_v18 = vadd.f32 %v3140_v47, %v4474_v39  ;;  %v3152_v61 = vadd.f32 %v4645_v50, %v4639_v45 }
 0x1ee   : > { %2230 = vst [vmem:[%s4599_s13 + $0x58] sm:$0xff] %v2028_v62  ;;  %v2020_v20 = vadd.f32 %v2019_v36, %v1859_v63  ;;  %v2118_v23 = vadd.f32 %v2117_v46, %v2017_v40  ;;  %v2187_v51 = vadd.f32 %v2186_v58, %v2156_v26  ;;  %v2160_v10 = vmul.f32 %v2028_v62, %v2028_v62 }
 0x1ef   : > { %v3156_v49 = vpop.f32.mrf.mxu1  ;;  %v3240_v13 = vpop.f32.mrf.mxu0  ;;  %v1899_v26 = vadd.f32 %v3149_v31, %v4495_v19 }
 0x1f0   : > { %v2158_v54 = vmul.f32 %v2020_v20, %v2020_v20  ;;  %2228 = vst [vmem:[%s4599_s13 + $0x48] sm:$0xff] %v2020_v20  ;;  %v2041_v35 = vadd.f32 %v3240_v13, %v1880_v21  ;;  %v2188_v60 = vadd.f32 %v2187_v51, %v2157_v34  ;;  %v2119_v42 = vadd.f32 %v2118_v23, %v2020_v20 }
 0x1f1   : > { %v3157_v56 = vpop.f32.mrf.mxu1  ;;  %v2032_v11 = vpop.f32.mrf.mxu0  ;;  %v1891_v20 = vadd.f32 %v3143_v24, %v4481_v25  ;;  %v3155_v25 = vadd.f32 %v4657_v33, %v4651_v30  ;;  %v4868_v24 = vld [vmem:[#allocation15_spill] sm:$0xff] }
 0x1f2   : > { %2233 = vst [vmem:[%s4599_s13 + $0x70] sm:$0xff] %v2041_v35  ;;  %v2033_v32 = vadd.f32 %v2032_v11, %v1872_v55  ;;  %v2120_v59 = vadd.f32 %v2119_v42, %v2025_v38  ;;  %v2189_v27 = vadd.f32 %v2188_v60, %v2158_v54  ;;  %v3158_v3 = vadd.f32 %v3157_v56, %v3156_v49  ;;  %v4865_v11 = vld [vmem:[#allocation9_spill] sm:$0xff] }
 0x1f3   : > { %v3159_v2 = vpop.f32.mrf.mxu1  ;;  %v3241_v17 = vpop.f32.mrf.mxu0  ;;  %v2163_v58 = vmul.f32 %v2041_v35, %v2041_v35  ;;  %v1904_v12 = vadd.f32 %v3152_v61, %v4865_v11 }
 0x1f4   : > { %2231 = vst [vmem:[%s4599_s13 + $0x60] sm:$0xff] %v2033_v32  ;;  %v2044_v44 = vadd.f32 %v3241_v17, %v1883_v52  ;;  %v2190_v37 = vadd.f32 %v2189_v27, %v2159_v15  ;;  %v2121_v4 = vadd.f32 %v2120_v59, %v2028_v62  ;;  %v2161_v7 = vmul.f32 %v2033_v32, %v2033_v32  ;;  %v4866_v17 = vld [vmem:[#allocation12_spill] sm:$0xff] }
 0x1f5   : > { %v3160_v41 = vpop.f32.mrf.mxu1  ;;  %v2035_v16 = vpop.f32.mrf.mxu0  ;;  %v1912_v54 = vadd.f32 %v3158_v3, %v4864_v28 }
 0x1f6   : > { %2234 = vst [vmem:[%s4599_s13 + $0x78] sm:$0xff] %v2044_v44  ;;  %v2036_v38 = vadd.f32 %v2035_v16, %v1875_v14  ;;  %v2122_v40 = vadd.f32 %v2121_v4, %v2033_v32  ;;  %v2191_v29 = vadd.f32 %v2190_v37, %v2160_v10  ;;  %v2164_v21 = vmul.f32 %v2044_v44, %v2044_v44 }
 0x1f7   : > { %v3162_v6 = vpop.f32.mrf.mxu1  ;;  %v3244_v0 = vpop.f32.mrf.mxu0  ;;  %v3161_v19 = vadd.f32 %v3160_v41, %v3159_v2  ;;  %v4867_v41 = vld [vmem:[#allocation10_spill] sm:$0xff] }
 0x1f8   : > { %v2162_v57 = vmul.f32 %v2036_v38, %v2036_v38  ;;  %2232 = vst [vmem:[%s4599_s13 + $0x68] sm:$0xff] %v2036_v38  ;;  %v2057_v5 = vadd.f32 %v3244_v0, %v1896_v43  ;;  %v2192_v1 = vadd.f32 %v2191_v29, %v2161_v7  ;;  %v2123_v9 = vadd.f32 %v2122_v40, %v2036_v38 }
 0x1f9   : > { %v3163_v8 = vpop.f32.mrf.mxu1  ;;  %v2048_v62 = vpop.f32.mrf.mxu0  ;;  %v1915_v47 = vadd.f32 %v3161_v19, %v4866_v17  ;;  %v1907_v16 = vadd.f32 %v3155_v25, %v4867_v41  ;;  %v4873_v41 = vld [vmem:[#allocation19_spill] sm:$0xff] }
 0x1fa   : > { %2237 = vst [vmem:[%s4599_s13 + $0x90] sm:$0xff] %v2057_v5  ;;  %v2049_v63 = vadd.f32 %v2048_v62, %v1888_v18  ;;  %v2124_v46 = vadd.f32 %v2123_v9, %v2041_v35  ;;  %v2193_v36 = vadd.f32 %v2192_v1, %v2162_v57  ;;  %v3164_v37 = vadd.f32 %v3163_v8, %v3162_v6 }
 0x1fb   : > { %v3165_v22 = vpop.f32.mrf.mxu1  ;;  %v3245_v48 = vpop.f32.mrf.mxu0 }
 0x1fc   : > { %2235 = vst [vmem:[%s4599_s13 + $0x80] sm:$0xff] %v2049_v63  ;;  %v2060_v39 = vadd.f32 %v3245_v48, %v1899_v26  ;;  %v2194_v23 = vadd.f32 %v2193_v36, %v2163_v58  ;;  %v2125_v34 = vadd.f32 %v2124_v46, %v2044_v44  ;;  %v2165_v55 = vmul.f32 %v2049_v63, %v2049_v63 }
 0x1fd   : > { %v3166_v51 = vpop.f32.mrf.mxu1  ;;  %v2051_v49 = vpop.f32.mrf.mxu0  ;;  %v2167_v44 = vmul.f32 %v2057_v5, %v2057_v5 }
 0x1fe   : > { %2238 = vst [vmem:[%s4599_s13 + $0x98] sm:$0xff] %v2060_v39  ;;  %v2052_v13 = vadd.f32 %v2051_v49, %v1891_v20  ;;  %v2126_v35 = vadd.f32 %v2125_v34, %v2049_v63  ;;  %v2195_v60 = vadd.f32 %v2194_v23, %v2164_v21  ;;  %v2168_v31 = vmul.f32 %v2060_v39, %v2060_v39  ;;  %v4869_v63 = vld [vmem:[#allocation13_spill] sm:$0xff] }
 0x1ff   : > { %v3168_v45 = vpop.f32.mrf.mxu1  ;;  %v3248_v50 = vpop.f32.mrf.mxu0  ;;  %v3167_v8 = vadd.f32 %v3166_v51, %v3165_v22  ;;  %v1920_v26 = vadd.f32 %v3164_v37, %v4869_v63 }
 0x200   : > { %v2166_v42 = vmul.f32 %v2052_v13, %v2052_v13  ;;  %2236 = vst [vmem:[%s4599_s13 + $0x88] sm:$0xff] %v2052_v13  ;;  %v2073_v56 = vadd.f32 %v3248_v50, %v1912_v54  ;;  %v2196_v32 = vadd.f32 %v2195_v60, %v2165_v55  ;;  %v2127_v52 = vadd.f32 %v2126_v35, %v2052_v13  ;;  %v4871_v13 = vld [vmem:[#allocation14_spill] sm:$0xff] }
 0x201   : > { %v3169_v15 = vpop.f32.mrf.mxu1  ;;  %v2064_v59 = vpop.f32.mrf.mxu0  ;;  %v1923_v28 = vadd.f32 %v3167_v8, %v4871_v13 }
 0x202   : > { %2241 = vst [vmem:[%s4599_s13 + $0xb0] sm:$0xff] %v2073_v56  ;;  %v3170_v27 = vadd.f32 %v3169_v15, %v3168_v45  ;;  %v2065_v2 = vadd.f32 %v2064_v59, %v1904_v12  ;;  %v2128_v14 = vadd.f32 %v2127_v52, %v2057_v5  ;;  %v2197_v10 = vadd.f32 %v2196_v32, %v2166_v42  ;;  %v4872_v15 = vld [vmem:[#allocation17_spill] sm:$0xff] }
 0x203   : > { %v3171_v30 = vpop.f32.mrf.mxu1  ;;  %v3249_v33 = vpop.f32.mrf.mxu0  ;;  %v2171_v21 = vmul.f32 %v2073_v56, %v2073_v56 }
 0x204   : > { %2239 = vst [vmem:[%s4599_s13 + $0xa0] sm:$0xff] %v2065_v2  ;;  %v2076_v4 = vadd.f32 %v3249_v33, %v1915_v47  ;;  %v2198_v38 = vadd.f32 %v2197_v10, %v2167_v44  ;;  %v2129_v43 = vadd.f32 %v2128_v14, %v2060_v39  ;;  %v1928_v57 = vadd.f32 %v3170_v27, %v4868_v24  ;;  %v4870_v39 = vld [vmem:[#allocation16_spill] sm:$0xff] }
 0x205   : > { %v3172_v40 = vpop.f32.mrf.mxu1  ;;  %v2067_v7 = vpop.f32.mrf.mxu0  ;;  %v2169_v18 = vmul.f32 %v2065_v2, %v2065_v2 }
 0x206   : > { %2242 = vst [vmem:[%s4599_s13 + $0xb8] sm:$0xff] %v2076_v4  ;;  %v3173_v29 = vadd.f32 %v3172_v40, %v3171_v30  ;;  %v2068_v0 = vadd.f32 %v2067_v7, %v1907_v16  ;;  %v2130_v5 = vadd.f32 %v2129_v43, %v2065_v2  ;;  %v2199_v1 = vadd.f32 %v2198_v38, %v2168_v31  ;;  %v4874_v31 = vld [vmem:[#allocation18_spill] sm:$0xff] }
 0x207   : > { %v3174_v6 = vpop.f32.mrf.mxu1  ;;  %v3252_v9 = vpop.f32.mrf.mxu0  ;;  %v2172_v54 = vmul.f32 %v2076_v4, %v2076_v4 }
 0x208   : > { %v2170_v62 = vmul.f32 %v2068_v0, %v2068_v0  ;;  %2240 = vst [vmem:[%s4599_s13 + $0xa8] sm:$0xff] %v2068_v0  ;;  %v2089_v3 = vadd.f32 %v3252_v9, %v1928_v57  ;;  %v2200_v58 = vadd.f32 %v2199_v1, %v2169_v18  ;;  %v2131_v46 = vadd.f32 %v2130_v5, %v2068_v0 }
 0x209   : > { %v3175_v36 = vpop.f32.mrf.mxu1  ;;  %v2080_v48 = vpop.f32.mrf.mxu0  ;;  %v1931_v20 = vadd.f32 %v3173_v29, %v4870_v39 }
 0x20a   : > { %2245 = vst [vmem:[%s4599_s13 + $0xd0] sm:$0xff] %v2089_v3  ;;  %v2081_v61 = vadd.f32 %v2080_v48, %v1920_v26  ;;  %v2132_v23 = vadd.f32 %v2131_v46, %v2073_v56  ;;  %v2201_v34 = vadd.f32 %v2200_v58, %v2170_v62  ;;  %v3176_v51 = vadd.f32 %v3175_v36, %v3174_v6 }
 0x20b   : > { %v3177_v49 = vpop.f32.mrf.mxu1  ;;  %v3253_v22 = vpop.f32.mrf.mxu0  ;;  %v2175_v10 = vmul.f32 %v2089_v3, %v2089_v3 }
 0x20c   : > { %2243 = vst [vmem:[%s4599_s13 + $0xc0] sm:$0xff] %v2081_v61  ;;  %v2092_v19 = vadd.f32 %v3253_v22, %v1931_v20  ;;  %v2202_v35 = vadd.f32 %v2201_v34, %v2171_v21  ;;  %v2133_v55 = vadd.f32 %v2132_v23, %v2076_v4  ;;  %v2173_v42 = vmul.f32 %v2081_v61, %v2081_v61 }
 0x20d   : > { %v3178_v60 = vpop.f32.mrf.mxu1  ;;  %v2083_v45 = vpop.f32.mrf.mxu0  ;;  %v1936_v59 = vadd.f32 %v3176_v51, %v4872_v15 }
 0x20e   : > { %2246 = vst [vmem:[%s4599_s13 + $0xd8] sm:$0xff] %v2092_v19  ;;  %v2084_v50 = vadd.f32 %v2083_v45, %v1923_v28  ;;  %v2134_v25 = vadd.f32 %v2133_v55, %v2081_v61  ;;  %v2203_v11 = vadd.f32 %v2202_v35, %v2172_v54  ;;  %v3179_v32 = vadd.f32 %v3178_v60, %v3177_v49 }
 0x20f   : > { %v3180_v56 = vpop.f32.mrf.mxu1  ;;  %v3256_v12 = vpop.f32.mrf.mxu0  ;;  %v2176_v43 = vmul.f32 %v2092_v19, %v2092_v19 }
 0x210   : > { %v2174_v52 = vmul.f32 %v2084_v50, %v2084_v50  ;;  %2244 = vst [vmem:[%s4599_s13 + $0xc8] sm:$0xff] %v2084_v50  ;;  %v2204_v27 = vadd.f32 %v2203_v11, %v2173_v42  ;;  %v2135_v2 = vadd.f32 %v2134_v25, %v2084_v50  ;;  %v1939_v38 = vadd.f32 %v3179_v32, %v4874_v31 }
 0x211   : > { %v3181_v17 = vpop.f32.mrf.mxu1  ;;  %v2096_v47 = vpop.f32.mrf.mxu0 }
 0x212   : > { %v3182_v44 = vadd.f32 %v3181_v17, %v3180_v56  ;;  %v2097_v14 = vadd.f32 %v2096_v47, %v1936_v59  ;;  %v2136_v30 = vadd.f32 %v2135_v2, %v2089_v3  ;;  %v2205_v33 = vadd.f32 %v2204_v27, %v2174_v52 }
 0x213   : > { %v3183_v37 = vpop.f32.mrf.mxu1  ;;  %v3257_v4 = vpop.f32.mrf.mxu0 }
 0x214   : > { %v1944_v16 = vadd.f32 %v3182_v44, %v4873_v41  ;;  %2247 = vst [vmem:[%s4599_s13 + $0xe0] sm:$0xff] %v2097_v14  ;;  %v2206_v40 = vadd.f32 %v2205_v33, %v2175_v10  ;;  %v2137_v7 = vadd.f32 %v2136_v30, %v2092_v19  ;;  %v2177_v1 = vmul.f32 %v2097_v14, %v2097_v14 }
 0x215   : > { %v3184_v29 = vpop.f32.mrf.mxu1  ;;  %v2099_v0 = vpop.f32.mrf.mxu0 }
 0x216   : > { %v2105_v24 = vadd.f32 %v3256_v12, %v1944_v16  ;;  %v3185_v57 = vadd.f32 %v3184_v29, %v3183_v37  ;;  %v2100_v5 = vadd.f32 %v2099_v0, %v1939_v38  ;;  %v2138_v18 = vadd.f32 %v2137_v7, %v2097_v14 }
 0x217   : > { %v2207_v6 = vadd.f32 %v2206_v40, %v2176_v43 }
 0x218   : > { %2249 = vst [vmem:[%s4599_s13 + $0xf0] sm:$0xff] %v2105_v24  ;;  %v1947_v9 = vadd.f32 %v3185_v57, %v4592_v53  ;;  %v2178_v8 = vmul.f32 %v2100_v5, %v2100_v5  ;;  %2248 = vst [vmem:[%s4599_s13 + $0xe8] sm:$0xff] %v2100_v5  ;;  %v2139_v3 = vadd.f32 %v2138_v18, %v2100_v5 }
 0x219   : > { %v2208_v62 = vadd.f32 %v2207_v6, %v2177_v1  ;;  %v2179_v26 = vmul.f32 %v2105_v24, %v2105_v24 }
 0x21a   : > { %v2108_v63 = vadd.f32 %v3257_v4, %v1947_v9  ;;  %v2140_v58 = vadd.f32 %v2139_v3, %v2105_v24 }
 0x21b   : > { %v2209_v46 = vadd.f32 %v2208_v62, %v2178_v8 }
 0x21c   : > { %v2180_v53 = vmul.f32 %v2108_v63, %v2108_v63  ;;  %2250 = vst [vmem:[%s4599_s13 + $0xf8] sm:$0xff] %v2108_v63  ;;  %v2141_v36 = vadd.f32 %v2140_v58, %v2108_v63 }
 0x21d   : > { %v2210_v48 = vadd.f32 %v2209_v46, %v2179_v26 }
 0x21e   : > { %3427 = shalt.err (!%p3424_p5)
}
 0x21f   : > { %s3428_s12 = scalar_lea.hbm %s4721_s17, 4096  ;;  %s3432_s27 = scalar_lea.hbm %s4846_s3, 8192 }
 0x220   : > { %p3429_p6 = scmp.ne.s32.totalorder %s4721_s17, %s3428_s12  ;;  %p3433_p10 = scmp.lt.s32.totalorder %s4721_s17, %s4846_s3 }
 0x221   : > { %p3434_p11 = scmp.lt.s32.totalorder %s3432_s27, %s3428_s12 }
 0x222   : > { %p3430_p7 = pnand %p3429_p6, %p3625_p4 }
 0x223   : > { %p3435_p12 = por %p3434_p11, %p3433_p10 }
 0x224   : > { %p3431_p9 = pneg %p3430_p7 }
 0x226   : > { %p3436_p13 = pnand %p3435_p12, %p3431_p9 }
 0x228   : > { %3439 = shalt.err (!%p3436_p13)
}
 0x229   : > { %s3549_s8 = smov 128   ;;  %s3550_s10 = smov 8   ;;  %v2142_v61 = vrot.slane %v2141_v36, 4  ;;  %v2211_v39 = vadd.f32 %v2210_v48, %v2180_v53 }
 0x22a   : > { %3275 = dma.vmem_to_hbm [thread:$0]  (%p3625_p4), %s4723_s15, 4096, %s4721_s17, %s2252_s7, %s3549_s8, %s3549_s8, %s3550_s10  }
 0x22b   : > { %v2212_v20 = vrot.slane %v2211_v39, 4  ;;  %v2143_v21 = vadd.f32 %v2142_v61, %v2141_v36  ;;  %s4751_s11 = sand.u32 1, %s2456_s24   ;;  %s2733_s12 = sshll.u32 %s3538_s21, 4 }
 0x22c   : > { %s269_s13 = scalar_lea.vmem [#allocation4], %s4570_s16  ;;  %s4850_s15 = scalar_lea.vmem [#allocation6], %s4570_s16 }
 0x22d   : > { %v2144_v23 = vrot.slane %v2143_v21, 2  ;;  %v2213_v34 = vadd.f32 %v2212_v20, %v2211_v39  ;;  %s2291_s14 = sshll.u32 %s269_s13, 4  ;;  %s2305_s17 = sshll.u32 %s4850_s15, 4  ;;  %s4763_s14 = int_to_ptr.vmem [resolvable:$true] %s2291_s14  ;;  %s4770_s17 = int_to_ptr.vmem [resolvable:$true] %s2305_s17 }
 0x22e   : > { %s4761_s29 = scalar_lea.hbm %s4847_s4, %s2733_s12  ;;  %s4768_s9 = scalar_lea.hbm %s4848_s5, %s2733_s12 }
 0x22f   : > { %v2145_v49 = vadd.f32 %v2144_v23, %v2143_v21  ;;  %v2214_v22 = vrot.slane %v2213_v34, 2  ;;  %s2257_s8 = scalar_lea.sflag [#allocation5], %s4751_s11  ;;  %s3440_s10 = scalar_lea.vmem %s4763_s14, 16 }
 0x230   : > { %p3441_p0 = scmp.ne.s32.totalorder %s4763_s14, %s3440_s10  ;;  %s3551_s7 = smov [#allocation4]  }
 0x231   : > { %v2146_v51 = vrot.slane %v2145_v49, 1  ;;  %v2215_v19 = vadd.f32 %v2214_v22, %v2213_v34  ;;  %s3444_s27 = sshll.u32 %s3551_s7, 4  ;;  %s3445_s27 = int_to_ptr.vmem [resolvable:$false] %s3444_s27 }
 0x232   : > { %p3442_p1 = pnand %p3441_p0, %p3625_p4  ;;  %s3446_s25 = scalar_lea.vmem %s3445_s27, 32 }
 0x233   : > { %v2147_v13 = vadd.f32 %v2146_v51, %v2145_v49  ;;  %v2216_v28 = vrot.slane %v2215_v19, 1  ;;  %p3447_p3 = scmp.lt.s32.totalorder %s4763_s14, %s3445_s27  ;;  %p3448_p5 = scmp.lt.s32.totalorder %s3446_s25, %s3440_s10 }
 0x234   : > { %p3443_p2 = pneg %p3442_p1 }
 0x235   : > { %2148 = vst [vmem:[%s269_s13] sm:$0x1] %v2147_v13  ;;  %v2217_v54 = vadd.f32 %v2216_v28, %v2215_v19  ;;  %p3449_p6 = por %p3448_p5, %p3447_p3 }
 0x237   : > { %p3450_p7 = pnand %p3449_p6, %p3443_p2 }
 0x239   : > { %3453 = shalt.err (!%p3450_p7)
}
 0x23a   : > { %s3454_s12 = scalar_lea.hbm %s4761_s29, 16  ;;  %s3458_s24 = scalar_lea.hbm %s4847_s4, 32 }
 0x23b   : > { %p3455_p9 = scmp.ne.s32.totalorder %s4761_s29, %s3454_s12  ;;  %p3459_p12 = scmp.lt.s32.totalorder %s4761_s29, %s4847_s4 }
 0x23c   : > { %p3460_p13 = scmp.lt.s32.totalorder %s3458_s24, %s3454_s12 }
 0x23d   : > { %p3456_p10 = pnand %p3455_p9, %p3625_p4 }
 0x23e   : > { %p3461_p0 = por %p3460_p13, %p3459_p12 }
 0x23f   : > { %p3457_p11 = pneg %p3456_p10 }
 0x241   : > { %p3462_p1 = pnand %p3461_p0, %p3457_p11 }
 0x243   : > { %3465 = shalt.err (!%p3462_p1)
}
 0x244   : > { %3276 = dma.vmem_to_hbm [thread:$0]  (%p3625_p4), %s4763_s14, 16, %s4761_s29, %s2257_s8  }
 0x245   : > { %s4875_s25 = scalar_lea.vmem [#allocation6], %s4570_s16  ;;  %s3466_s15 = scalar_lea.vmem %s4770_s17, 16 }
 0x246   : > { %2218 = vst [vmem:[%s4875_s25] sm:$0x1] %v2217_v54  ;;  %p3467_p2 = scmp.ne.s32.totalorder %s4770_s17, %s3466_s15  ;;  %s3552_s10 = smov [#allocation6]  }
 0x247   : > { %s3470_s27 = sshll.u32 %s3552_s10, 4  ;;  %s3471_s27 = int_to_ptr.vmem [resolvable:$false] %s3470_s27 }
 0x248   : > { %p3468_p3 = pnand %p3467_p2, %p3625_p4  ;;  %s3472_s12 = scalar_lea.vmem %s3471_s27, 32 }
 0x249   : > { %p3473_p6 = scmp.lt.s32.totalorder %s4770_s17, %s3471_s27  ;;  %p3474_p7 = scmp.lt.s32.totalorder %s3472_s12, %s3466_s15 }
 0x24a   : > { %p3469_p5 = pneg %p3468_p3 }
 0x24b   : > { %p3475_p9 = por %p3474_p7, %p3473_p6 }
 0x24d   : > { %p3476_p10 = pnand %p3475_p9, %p3469_p5 }
 0x24f   : > { %3479 = shalt.err (!%p3476_p10)
}
 0x250   : > { %s3480_s16 = scalar_lea.hbm %s4768_s9, 16  ;;  %s3484_s13 = scalar_lea.hbm %s4848_s5, 32 }
 0x251   : > { %p3481_p11 = scmp.ne.s32.totalorder %s4768_s9, %s3480_s16  ;;  %p3485_p0 = scmp.lt.s32.totalorder %s4768_s9, %s4848_s5 }
 0x252   : > { %p3486_p1 = scmp.lt.s32.totalorder %s3484_s13, %s3480_s16 }
 0x253   : > { %p3482_p12 = pnand %p3481_p11, %p3625_p4 }
 0x254   : > { %p3487_p2 = por %p3486_p1, %p3485_p0 }
 0x255   : > { %p3483_p13 = pneg %p3482_p12 }
 0x257   : > { %p3488_p3 = pnand %p3487_p2, %p3483_p13 }
 0x259   : > { %3491 = shalt.err (!%p3488_p3)
}
 0x25a   : > { %3277 = dma.vmem_to_hbm [thread:$0]  (%p3625_p4), %s4770_s17, 16, %s4768_s9, %s2257_s8  }
 0x25b PF: > { %p3291_p5 = scmp.ge.s32.totalorder %s3546_s23, 2  ;;  %s2317_s7 = sand.u32 1, %s3526_s18  }
 0x25c   : > { %s2318_s25 = scalar_lea.sflag [#allocation3], %s2317_s7 }
 0x25d   : > { %p3282_p6 = pnand %p3291_p5, %p3634_p8 }
 0x25f   : > { %p3283_p7 = pneg %p3282_p6 }
 0x261   : > { %3517 = dma.done.wait (%p3283_p7), %s2318_s25, 4096  }
 0x262   : > { %3519 = vsyncadd (%p3283_p7), %s2318_s25, 4294963200  ;;  %s4876_s15 = sadd.s32 4294967294, %s3546_s23  }
 0x263   : > { %s2326_s28 = sand.u32 1, %s4876_s15  }
 0x264   : > { %s2327_s10 = scalar_lea.sflag [#allocation5], %s2326_s28 }
 0x265   : > { %3521 = dma.done.wait (%p3283_p7), %s2327_s10, 32  }
 0x266   : > { %3523 = vsyncadd (%p3283_p7), %s2327_s10, 4294967264  ;;  %s22_s23 = sadd.s32 1, %s3546_s23   ;;  %s4877_s18 = smov %s3530_s19 }
 0x267   : > { %p19_p4 = scmp.ge.s32.totalorder %s22_s23, 4   ;;  %s4878_s19 = smov %s3534_s20 }
 0x268   : > { %s4879_s20 = smov %s3640_s6  ;;  %s4880_s21 = smov %s3542_s22 }
 0x269   : > { %s4881_s22 = smov %s4883_s26  ;;  %21 = sbr.rel (!%p19_p4) target bundleno = 6 (0x6), region = 107 }
 0x26e   :  { %2339 = vsyncpa [#allocation3], 1 }
 0x26f   :  { %2341 = vsyncpa [#allocation3 + $0x1], 1 }
 0x270   :  { %2342 = vsyncpa [#allocation5], 1 }
 0x271   :  { %2344 = vsyncpa [#allocation5 + $0x1], 1 }

</bundles_post_ra>
